<compile_context>
chip_gen: v7x
topology: tpu7x:2x2x1
jax: 0.10.0
libtpu: 0.0.40
codegen_flags: <defaults>
</compile_context>

<pallas_src>
import functools
import math

import numpy as np
import jax
import jax.numpy as jnp
from jax.experimental import pallas as pl
from jax.experimental.pallas import tpu as pltpu

EPS_AGG = 1e-5                    # PNA std-aggregator epsilon
EPS_BN = 1e-5                     # BatchNorm epsilon
MATMUL_DTYPE = jnp.bfloat16       # MXU operand dtype (jnp.float32 for exact parity)
BIG = 1e30                        # arithmetic-mask sentinel for max/min


# --------------------------------------------------------------------------
# Fused Pallas kernel: all PNA layers + mean readout + MLPReadout
# --------------------------------------------------------------------------
def pna_net_kernel(h_ref, a_ref, snorm_ref, w_ref, b_ref, out_ref, *,
                   n_layers, avg_d_log, residual):
    """w_ref : ((L+1)*3, 5D, 3D) packed weight slab (MATMUL_DTYPE).
         slot 3l+0 : pretrans  [Wsrc | Wdst]         in [:D, :2D]
         slot 3l+1 : fused posttrans (BN-scaled)     full (5D, 3D)
         slot 3l+2 : mixing Linear                   in [:D, :D]
         slots 3L+{0,1,2} : MLPReadout weights (zero-padded)
       b_ref : ((L+1)*3, D) f32 bias slab:
         rows 3l+{0,1,2} = bp, bpost*bn_scale, bmix + bn_shift@Wmix,
         rows 3L+{0,1,2} = MLPReadout biases (zero-padded).
    """
    wdt = w_ref.dtype
    h = h_ref[...]                                  # (N, D) f32 node features
    A = a_ref[...]                                  # (N, N), A[i, j] = 1 iff edge j -> i
    snorm = snorm_ref[...]                          # (N, 1) graph-norm factor
    b_all = b_ref[...]                              # ((L+1)*3, D) f32
    D = h.shape[1]

    # ---- degree-derived quantities: depend only on A, computed once ------
    # TODO(synk): padded zero-degree nodes (future batched graphs) need a
    #             jnp.where(deg > 0, ...) guard here and on the masked reduce.
    deg = jnp.sum(A, axis=1, keepdims=True)         # (N, 1)
    inv_deg = 1.0 / deg                             # exact (parity with torch)
    logd = jnp.log(deg + 1.0)
    amp = logd * (1.0 / avg_d_log)                  # amplification scaler
    att = avg_d_log / logd                          # attenuation scaler
    neg_mask = (A - 1.0) * jnp.float32(BIG)         # 0 on edges, -BIG elsewhere
    A_mm = A.astype(wdt)                            # 0/1 -> exact in bf16

    for l in range(n_layers):
        wpre = w_ref[3 * l + 0, :D, :2 * D]         # (D, 2D)
        wfused = w_ref[3 * l + 1]                   # (5D, 3D)
        wmix = w_ref[3 * l + 2, :D, :D]             # (D, D)
        bp = b_all[3 * l + 0:3 * l + 1, :]          # (1, D)
        bpost = b_all[3 * l + 1:3 * l + 2, :]
        bmix = b_all[3 * l + 2:3 * l + 3, :]

        # pretrans MLP (1 layer, no activation), fused:
        #   e[i, j, :] = S[j] + T[i]   with  [S | T - bias] = h @ [Wsrc | Wdst]
        ST = jnp.dot(h.astype(wdt), wpre, preferred_element_type=jnp.float32)
        S = ST[:, :D]
        T = ST[:, D:] + bp

        # mean / std aggregators via ONE matmul:  A @ [S | S*S]
        SS = jnp.concatenate([S, S * S], axis=1)                       # (N, 2D)
        ASS = jnp.dot(A_mm, SS.astype(wdt), preferred_element_type=jnp.float32)
        mS = ASS[:, :D] * inv_deg                                      # E_j[S]
        mS2 = ASS[:, D:] * inv_deg                                     # E_j[S^2]
        var = jnp.maximum(mS2 - mS * mS, 0.0)                          # Var_j[e] == Var_j[S]
        mean_agg = mS + T
        std_agg = jnp.sqrt(var + EPS_AGG)

        # max & min aggregators in ONE masked reduce over [S | -S]
        S_pm = jnp.concatenate([S, -S], axis=1)                        # (N, 2D)
        r = jnp.max(S_pm[None, :, :] + neg_mask[:, :, None], axis=1)   # (N, 2D)
        max_agg = r[:, :D] + T
        min_agg = -r[:, D:] + T

        # posttrans MLP (1 layer) on cat([h, scaler x aggregator]) as a single
        # dot (BN-eval scale pre-folded into wfused/bpost); per-row amp/att
        # scalers applied AFTER the matmul (valid: they are per-row scales).
        Z = jnp.concatenate([h, mean_agg, max_agg, min_agg, std_agg], axis=1)  # (N, 5D)
        Y = jnp.dot(Z.astype(wdt), wfused, preferred_element_type=jnp.float32)  # (N, 3D)
        acc = bpost + Y[:, :D] + amp * Y[:, D:2 * D] + att * Y[:, 2 * D:]

        # graph norm; BatchNorm (eval) already folded; dropout = identity
        acc = acc * snorm

        # mixing network: Linear + LeakyReLU(0.01)  (bn_shift folded into bmix)
        mixed = jnp.dot(acc.astype(wdt), wmix,
                        preferred_element_type=jnp.float32) + bmix
        mixed = jnp.where(mixed > 0, mixed, 0.01 * mixed)

        h = h + mixed if residual else mixed

    # readout: dgl.mean_nodes (single graph) + MLPReadout(D -> D/2 -> D/4 -> 1)
    lr = 3 * n_layers
    d1, d2 = D // 2, D // 4
    hg = jnp.mean(h, axis=0, keepdims=True)                            # (1, D)
    y = jnp.dot(hg.astype(wdt), w_ref[lr + 0, :D, :d1],
                preferred_element_type=jnp.float32) + b_all[lr + 0:lr + 1, :d1]
    y = jnp.maximum(y, 0.0)
    y = jnp.dot(y.astype(wdt), w_ref[lr + 1, :d1, :d2],
                preferred_element_type=jnp.float32) + b_all[lr + 1:lr + 2, :d2]
    y = jnp.maximum(y, 0.0)
    y = jnp.dot(y.astype(wdt), w_ref[lr + 2, :d2, :1],
                preferred_element_type=jnp.float32) + b_all[lr + 2:lr + 3, :1]
    out_ref[...] = y


# --------------------------------------------------------------------------
# Parameter packing (one-time, host side)
# --------------------------------------------------------------------------
def prepare_kernel_params(params, matmul_dtype=MATMUL_DTYPE):
    """Re-layout module parameters into two packed slabs (weights / biases)."""
    layers = params["layers"]
    L = len(layers)
    D = int(layers[0]["bp"].shape[1])
    for lp in layers:
        # packed layout assumes hidden_dim == out_dim (true for the ZINC config)
        assert lp["bp"].shape[1] == D and lp["bpost"].shape[1] == D

    w_slab = np.zeros(((L + 1) * 3, 5 * D, 3 * D), np.float32)
    b_slab = np.zeros(((L + 1) * 3, D), np.float32)

    for l, lp in enumerate(layers):
        wp = np.asarray(lp["wp"], np.float32)                 # (2D, D): [Wsrc; Wdst]
        wpost = np.asarray(lp["wpost"], np.float32)           # (13D, D)
        bn_scale = (np.asarray(lp["bn_gamma"], np.float32)
                    / np.sqrt(np.asarray(lp["bn_var"], np.float32) + EPS_BN))   # (1, D)
        bn_shift = (np.asarray(lp["bn_beta"], np.float32)
                    - np.asarray(lp["bn_mean"], np.float32) * bn_scale)

        # pretrans: [Wsrc | Wdst] side by side -> one (D, 2D) matmul
        w_slab[3 * l + 0, :D, :2 * D] = np.concatenate([wp[:D], wp[D:]], axis=1)

        # fused posttrans (5D, 3D): rows [h | X(4D)], col blocks [id | amp | att].
        # h feeds only the identity block.  Column order of wpost follows the
        # PyTorch cat([h, (mean,max,min,std) x (identity, amp, att)]) layout.
        wf = np.zeros((5 * D, 3 * D), np.float32)
        wf[:D, :D] = wpost[:D]
        wf[D:, :D] = wpost[D:5 * D]
        wf[D:, D:2 * D] = wpost[5 * D:9 * D]
        wf[D:, 2 * D:] = wpost[9 * D:13 * D]
        w_slab[3 * l + 1] = wf * np.tile(bn_scale, (1, 3))    # fold BN-eval scale

        wmix = np.asarray(lp["wmix"], np.float32)
        w_slab[3 * l + 2, :D, :D] = wmix

        b_slab[3 * l + 0] = np.asarray(lp["bp"], np.float32)[0]
        b_slab[3 * l + 1] = (np.asarray(lp["bpost"], np.float32) * bn_scale)[0]
        b_slab[3 * l + 2] = (np.asarray(lp["bmix"], np.float32) + bn_shift @ wmix)[0]

    # MLPReadout(out_dim, 1, L=2): D -> D/2 -> D/4 -> 1 (zero-padded slots)
    w1, b1, w2, b2, w3, b3 = [np.asarray(t, np.float32) for t in params["mlp"]]
    d1, d2 = D // 2, D // 4
    w_slab[3 * L + 0, :D, :d1] = w1
    w_slab[3 * L + 1, :d1, :d2] = w2
    w_slab[3 * L + 2, :d2, :1] = w3
    b_slab[3 * L + 0, :d1] = b1[0]
    b_slab[3 * L + 1, :d2] = b2[0]
    b_slab[3 * L + 2, :1] = b3[0]

    return {
        "emb_h": params["emb_h"],
        "w_slab": jnp.asarray(w_slab, matmul_dtype),
        "b_slab": jnp.asarray(b_slab, jnp.float32),
        "n_layers": L,
        "dim": D,
    }


# --------------------------------------------------------------------------
# Wrapper
# --------------------------------------------------------------------------
def _cost_estimate(n_nodes, dim, n_layers, bytes_accessed):
    N, D = n_nodes, dim
    per_layer = (2 * N * D * 2 * D            # pretrans dot
                 + 2 * N * N * 2 * D          # mean/std aggregation dot
                 + N * N * 2 * D              # masked max/min reduce
                 + 2 * N * 5 * D * 3 * D      # fused posttrans dot
                 + 2 * N * D * D              # mixing dot
                 + 16 * N * D)                # elementwise
    mlp = 2 * (D * (D // 2) + (D // 2) * (D // 4) + (D // 4))
    return pl.CostEstimate(
        flops=int(n_layers * per_layer + mlp),
        transcendentals=int(n_layers * N * D + 2 * N),
        bytes_accessed=int(bytes_accessed))


def pna_net_forward(kparams, atom_types, A, snorm_n, avg_d_log):
    # embedding_h: gather (glue); in_feat_dropout: identity in eval mode.
    # pe_init == 'no_pe': positional-encoding branch disabled.
    # edge_feat == False / gru == False: those branches disabled by config.
    h = jnp.take(kparams["emb_h"], atom_types, axis=0).astype(jnp.float32)
    args = (h, A, snorm_n, kparams["w_slab"], kparams["b_slab"])
    bytes_accessed = sum(int(a.size) * a.dtype.itemsize for a in args) + 4

    kern = functools.partial(pna_net_kernel, n_layers=kparams["n_layers"],
                             avg_d_log=float(avg_d_log), residual=True)
    vmem = pl.BlockSpec(memory_space=pltpu.MemorySpace.VMEM)
    # TODO(synk): DGL multi-graph batching -> add a per-graph 'parallel' grid
    #   axis (shards across v7x's 2 TensorCores) with per-graph BlockSpecs for
    #   h/A/snorm and a tiled max/min reduce + vmem_limit_bytes for large N.
    return pl.pallas_call(
        kern,
        out_shape=jax.ShapeDtypeStruct((1, 1), jnp.float32),
        in_specs=[vmem] * len(args),
        out_specs=vmem,
        cost_estimate=_cost_estimate(h.shape[0], kparams["dim"],
                                     kparams["n_layers"], bytes_accessed),
    )(*args)


# --------------------------------------------------------------------------
# Deterministic parameter init (synthetic; shapes follow the PyTorch module)
# --------------------------------------------------------------------------
def _linear(key, fan_in, fan_out):
    k1, k2 = jax.random.split(key)
    bound = 1.0 / math.sqrt(fan_in)
    w = jax.random.uniform(k1, (fan_in, fan_out), jnp.float32, -bound, bound)
    b = jax.random.uniform(k2, (1, fan_out), jnp.float32, -bound, bound)
    return w, b


def init_params(key, num_atom_type, hidden_dim, out_dim, n_layers):
    keys = jax.random.split(key, n_layers + 2)
    params = {"emb_h": jax.random.normal(keys[0], (num_atom_type, hidden_dim),
                                         jnp.float32)}
    layers = []
    for l in range(n_layers):
        d_in = hidden_dim
        d_out = hidden_dim if l < n_layers - 1 else out_dim
        ks = jax.random.split(keys[l + 1], 5)
        wp, bp = _linear(ks[0], 2 * d_in, d_in)            # pretrans: cat(h_i,h_j)->d_in
        wpost, bpost = _linear(ks[1], 13 * d_in, d_out)    # posttrans: (1+4*3)*d_in->d_out
        wmix, bmix = _linear(ks[2], d_out, d_out)          # mixing FCLayer
        bn_gamma = jnp.ones((1, d_out), jnp.float32) + 0.1 * jax.random.normal(ks[3], (1, d_out))
        bn_beta = 0.1 * jax.random.normal(ks[4], (1, d_out))
        layers.append(dict(
            wp=wp, bp=bp, wpost=wpost, bpost=bpost, wmix=wmix, bmix=bmix,
            bn_gamma=bn_gamma, bn_beta=bn_beta,
            bn_mean=jnp.zeros((1, d_out), jnp.float32),
            bn_var=jnp.ones((1, d_out), jnp.float32)))
    params["layers"] = layers
    km = jax.random.split(keys[-1], 3)
    w1, b1 = _linear(km[0], out_dim, out_dim // 2)
    w2, b2 = _linear(km[1], out_dim // 2, out_dim // 4)
    w3, b3 = _linear(km[2], out_dim // 4, 1)
    params["mlp"] = (w1, b1, w2, b2, w3, b3)
    return params


def build_graph(n_nodes):
    # ring + a few chords so every node has in-degree >= 1 and degrees vary
    A = np.zeros((n_nodes, n_nodes), np.float32)

    def add(u, v):
        A[v, u] = 1.0   # edge u -> v (message from src u to dst v)
        A[u, v] = 1.0

    for i in range(n_nodes):
        add(i, (i + 1) % n_nodes)
    for (u, v) in [(0, 5), (3, 11), (7, 14)]:
        add(u, v)
    return A


# --------------------------------------------------------------------------
if __name__ == "__main__":
    NUM_ATOM_TYPE = 28
    HIDDEN = 32
    OUT = 32
    N_LAYERS = 2
    N_NODES = 16

    key = jax.random.PRNGKey(0)
    kp, kd = jax.random.split(key)
    params = init_params(kp, NUM_ATOM_TYPE, HIDDEN, OUT, N_LAYERS)
    kparams = prepare_kernel_params(params)      # one-time weight packing/folding

    atom_types = jax.random.randint(kd, (N_NODES,), 0, NUM_ATOM_TYPE)
    A_np = build_graph(N_NODES)
    deg = A_np.sum(axis=1)
    # avg_d['log'] is a dataset-level hyperparameter in PNA; here derived from
    # this graph's degrees for the synthetic example.
    avg_d_log = float(np.mean(np.log(deg + 1.0)))
    A = jnp.asarray(A_np)
    snorm_n = jnp.full((N_NODES, 1), 1.0 / math.sqrt(N_NODES), jnp.float32)

    score = pna_net_forward(kparams, atom_types, A, snorm_n, avg_d_log)
    score = jax.block_until_ready(score)
    assert score.shape == (1, 1) and score.dtype == jnp.float32
    assert bool(jnp.all(jnp.isfinite(score)))
    print("KERNEL_OK")
</pallas_src>

<mosaic_0001>
module attributes {stable_mosaic.version = 11 : i64} {
  func.func @pna_net_kernel(%arg0: memref<16x32xf32, #tpu.memory_space<vmem>>, %arg1: memref<16x16xf32, #tpu.memory_space<vmem>>, %arg2: memref<16x1xf32, #tpu.memory_space<vmem>>, %arg3: memref<9x160x96xbf16, #tpu.memory_space<vmem>>, %arg4: memref<9x32xf32, #tpu.memory_space<vmem>>, %arg5: memref<1x1xf32, #tpu.memory_space<vmem>>) attributes {dimension_semantics = [], scalar_prefetch = 0 : i64, scratch_operands = 0 : i64, tpu.core_type = #tpu.core_type<tc>} {
    %c0 = arith.constant 0 : index
    %c0_0 = arith.constant 0 : index
    %0 = vector.load %arg0[%c0, %c0_0] : memref<16x32xf32, #tpu.memory_space<vmem>>, vector<16x32xf32>
    %c0_1 = arith.constant 0 : index
    %c0_2 = arith.constant 0 : index
    %1 = vector.load %arg1[%c0_1, %c0_2] : memref<16x16xf32, #tpu.memory_space<vmem>>, vector<16x16xf32>
    %c0_3 = arith.constant 0 : index
    %c0_4 = arith.constant 0 : index
    %2 = vector.load %arg2[%c0_3, %c0_4] : memref<16x1xf32, #tpu.memory_space<vmem>>, vector<16x1xf32>
    %c0_5 = arith.constant 0 : index
    %c0_6 = arith.constant 0 : index
    %3 = vector.load %arg4[%c0_5, %c0_6] : memref<9x32xf32, #tpu.memory_space<vmem>>, vector<9x32xf32>
    %cst = arith.constant dense<0.000000e+00> : vector<16xf32>
    %4 = vector.multi_reduction <add>, %1, %cst [1] : vector<16x16xf32> to vector<16xf32>
    %5 = vector.shape_cast %4 : vector<16xf32> to vector<16x1xf32>
    %cst_7 = arith.constant 1.000000e+00 : f32
    %6 = vector.broadcast %cst_7 : f32 to vector<16x1xf32>
    %7 = arith.divf %6, %5 : vector<16x1xf32>
    %cst_8 = arith.constant 1.000000e+00 : f32
    %8 = vector.broadcast %cst_8 : f32 to vector<16x1xf32>
    %9 = arith.addf %5, %8 : vector<16x1xf32>
    %10 = math.log %9 : vector<16x1xf32>
    %cst_9 = arith.constant 0.828848481 : f32
    %11 = vector.broadcast %cst_9 : f32 to vector<16x1xf32>
    %12 = arith.mulf %10, %11 : vector<16x1xf32>
    %cst_10 = arith.constant 1.20649314 : f32
    %13 = vector.broadcast %cst_10 : f32 to vector<16x1xf32>
    %14 = arith.divf %13, %10 : vector<16x1xf32>
    %cst_11 = arith.constant 1.000000e+00 : f32
    %15 = vector.broadcast %cst_11 : f32 to vector<16x16xf32>
    %16 = arith.subf %1, %15 : vector<16x16xf32>
    %cst_12 = arith.constant 1.000000e+30 : f32
    %17 = vector.broadcast %cst_12 : f32 to vector<16x16xf32>
    %18 = arith.mulf %16, %17 : vector<16x16xf32>
    %19 = arith.truncf %1 : vector<16x16xf32> to vector<16x16xbf16>
    %c0_13 = arith.constant 0 : index
    %c0_14 = arith.constant 0 : index
    %c0_15 = arith.constant 0 : index
    %20 = vector.load %arg3[%c0_13, %c0_14, %c0_15] : memref<9x160x96xbf16, #tpu.memory_space<vmem>>, vector<1x32x64xbf16>
    %21 = vector.shape_cast %20 : vector<1x32x64xbf16> to vector<32x64xbf16>
    %c1 = arith.constant 1 : index
    %c0_16 = arith.constant 0 : index
    %c0_17 = arith.constant 0 : index
    %22 = vector.load %arg3[%c1, %c0_16, %c0_17] : memref<9x160x96xbf16, #tpu.memory_space<vmem>>, vector<1x160x96xbf16>
    %23 = vector.shape_cast %22 : vector<1x160x96xbf16> to vector<160x96xbf16>
    %c2 = arith.constant 2 : index
    %c0_18 = arith.constant 0 : index
    %c0_19 = arith.constant 0 : index
    %24 = vector.load %arg3[%c2, %c0_18, %c0_19] : memref<9x160x96xbf16, #tpu.memory_space<vmem>>, vector<1x32x32xbf16>
    %25 = vector.shape_cast %24 : vector<1x32x32xbf16> to vector<32x32xbf16>
    %26 = vector.extract_strided_slice %3 {offsets = [0, 0], sizes = [1, 32], strides = [1, 1]} : vector<9x32xf32> to vector<1x32xf32>
    %27 = vector.extract_strided_slice %3 {offsets = [1, 0], sizes = [1, 32], strides = [1, 1]} : vector<9x32xf32> to vector<1x32xf32>
    %28 = vector.extract_strided_slice %3 {offsets = [2, 0], sizes = [1, 32], strides = [1, 1]} : vector<9x32xf32> to vector<1x32xf32>
    %29 = arith.truncf %0 : vector<16x32xf32> to vector<16x32xbf16>
    %cst_20 = arith.constant dense<0.000000e+00> : vector<16x64xf32>
    %30 = tpu.matmul %29, %21, %cst_20 {dimension_numbers = #tpu.dot_dimension_numbers<[1], [0], [0], [1], [0, 0, 1, 1], [], []>} : vector<16x32xbf16>, vector<32x64xbf16>, vector<16x64xf32> -> vector<16x64xf32>
    %31 = vector.extract_strided_slice %30 {offsets = [0, 0], sizes = [16, 32], strides = [1, 1]} : vector<16x64xf32> to vector<16x32xf32>
    %32 = vector.extract_strided_slice %30 {offsets = [0, 32], sizes = [16, 32], strides = [1, 1]} : vector<16x64xf32> to vector<16x32xf32>
    %33 = vector.broadcast %26 : vector<1x32xf32> to vector<16x32xf32>
    %34 = arith.addf %32, %33 : vector<16x32xf32>
    %35 = arith.mulf %31, %31 : vector<16x32xf32>
    %36 = tpu.concatenate %31, %35 in 1 : vector<16x32xf32>, vector<16x32xf32> -> vector<16x64xf32>
    %37 = arith.truncf %36 : vector<16x64xf32> to vector<16x64xbf16>
    %cst_21 = arith.constant dense<0.000000e+00> : vector<16x64xf32>
    %38 = tpu.matmul %19, %37, %cst_21 {dimension_numbers = #tpu.dot_dimension_numbers<[1], [0], [0], [1], [0, 0, 1, 1], [], []>} : vector<16x16xbf16>, vector<16x64xbf16>, vector<16x64xf32> -> vector<16x64xf32>
    %39 = vector.extract_strided_slice %38 {offsets = [0, 0], sizes = [16, 32], strides = [1, 1]} : vector<16x64xf32> to vector<16x32xf32>
    %40 = vector.broadcast %7 : vector<16x1xf32> to vector<16x32xf32>
    %41 = arith.mulf %39, %40 : vector<16x32xf32>
    %42 = vector.extract_strided_slice %38 {offsets = [0, 32], sizes = [16, 32], strides = [1, 1]} : vector<16x64xf32> to vector<16x32xf32>
    %43 = vector.broadcast %7 : vector<16x1xf32> to vector<16x32xf32>
    %44 = arith.mulf %42, %43 : vector<16x32xf32>
    %45 = arith.mulf %41, %41 : vector<16x32xf32>
    %46 = arith.subf %44, %45 : vector<16x32xf32>
    %cst_22 = arith.constant 0.000000e+00 : f32
    %47 = vector.broadcast %cst_22 : f32 to vector<16x32xf32>
    %48 = arith.maximumf %46, %47 : vector<16x32xf32>
    %49 = arith.addf %41, %34 : vector<16x32xf32>
    %cst_23 = arith.constant 9.99999974E-6 : f32
    %50 = vector.broadcast %cst_23 : f32 to vector<16x32xf32>
    %51 = arith.addf %48, %50 : vector<16x32xf32>
    %52 = math.sqrt %51 : vector<16x32xf32>
    %cst_24 = arith.constant 0.000000e+00 : f32
    %53 = vector.broadcast %cst_24 : f32 to vector<16x32xf32>
    %54 = arith.subf %53, %31 : vector<16x32xf32>
    %55 = tpu.concatenate %31, %54 in 1 : vector<16x32xf32>, vector<16x32xf32> -> vector<16x64xf32>
    %56 = vector.shape_cast %55 : vector<16x64xf32> to vector<1x16x64xf32>
    %57 = vector.shape_cast %18 : vector<16x16xf32> to vector<16x16x1xf32>
    %58 = vector.broadcast %56 : vector<1x16x64xf32> to vector<16x16x64xf32>
    %59 = vector.broadcast %57 : vector<16x16x1xf32> to vector<16x16x64xf32>
    %60 = arith.addf %58, %59 : vector<16x16x64xf32>
    %cst_25 = arith.constant dense<0xFF800000> : vector<16x64xf32>
    %61 = vector.multi_reduction <maximumf>, %60, %cst_25 [1] : vector<16x16x64xf32> to vector<16x64xf32>
    %62 = vector.extract_strided_slice %61 {offsets = [0, 0], sizes = [16, 32], strides = [1, 1]} : vector<16x64xf32> to vector<16x32xf32>
    %63 = arith.addf %62, %34 : vector<16x32xf32>
    %64 = vector.extract_strided_slice %61 {offsets = [0, 32], sizes = [16, 32], strides = [1, 1]} : vector<16x64xf32> to vector<16x32xf32>
    %cst_26 = arith.constant 0.000000e+00 : f32
    %65 = vector.broadcast %cst_26 : f32 to vector<16x32xf32>
    %66 = arith.subf %65, %64 : vector<16x32xf32>
    %67 = arith.addf %66, %34 : vector<16x32xf32>
    %68 = tpu.concatenate %0, %49, %63, %67, %52 in 1 : vector<16x32xf32>, vector<16x32xf32>, vector<16x32xf32>, vector<16x32xf32>, vector<16x32xf32> -> vector<16x160xf32>
    %69 = arith.truncf %68 : vector<16x160xf32> to vector<16x160xbf16>
    %cst_27 = arith.constant dense<0.000000e+00> : vector<16x96xf32>
    %70 = tpu.matmul %69, %23, %cst_27 {dimension_numbers = #tpu.dot_dimension_numbers<[1], [0], [0], [1], [0, 0, 1, 1], [], []>} : vector<16x160xbf16>, vector<160x96xbf16>, vector<16x96xf32> -> vector<16x96xf32>
    %71 = vector.extract_strided_slice %70 {offsets = [0, 0], sizes = [16, 32], strides = [1, 1]} : vector<16x96xf32> to vector<16x32xf32>
    %72 = vector.broadcast %27 : vector<1x32xf32> to vector<16x32xf32>
    %73 = arith.addf %72, %71 : vector<16x32xf32>
    %74 = vector.extract_strided_slice %70 {offsets = [0, 32], sizes = [16, 32], strides = [1, 1]} : vector<16x96xf32> to vector<16x32xf32>
    %75 = vector.broadcast %12 : vector<16x1xf32> to vector<16x32xf32>
    %76 = arith.mulf %75, %74 : vector<16x32xf32>
    %77 = arith.addf %73, %76 : vector<16x32xf32>
    %78 = vector.extract_strided_slice %70 {offsets = [0, 64], sizes = [16, 32], strides = [1, 1]} : vector<16x96xf32> to vector<16x32xf32>
    %79 = vector.broadcast %14 : vector<16x1xf32> to vector<16x32xf32>
    %80 = arith.mulf %79, %78 : vector<16x32xf32>
    %81 = arith.addf %77, %80 : vector<16x32xf32>
    %82 = vector.broadcast %2 : vector<16x1xf32> to vector<16x32xf32>
    %83 = arith.mulf %81, %82 : vector<16x32xf32>
    %84 = arith.truncf %83 : vector<16x32xf32> to vector<16x32xbf16>
    %cst_28 = arith.constant dense<0.000000e+00> : vector<16x32xf32>
    %85 = tpu.matmul %84, %25, %cst_28 {dimension_numbers = #tpu.dot_dimension_numbers<[1], [0], [0], [1], [0, 0, 1, 1], [], []>} : vector<16x32xbf16>, vector<32x32xbf16>, vector<16x32xf32> -> vector<16x32xf32>
    %86 = vector.broadcast %28 : vector<1x32xf32> to vector<16x32xf32>
    %87 = arith.addf %85, %86 : vector<16x32xf32>
    %cst_29 = arith.constant 0.000000e+00 : f32
    %88 = vector.broadcast %cst_29 : f32 to vector<16x32xf32>
    %89 = arith.cmpf ogt, %87, %88 : vector<16x32xf32>
    %cst_30 = arith.constant 0.00999999977 : f32
    %90 = vector.broadcast %cst_30 : f32 to vector<16x32xf32>
    %91 = arith.mulf %90, %87 : vector<16x32xf32>
    %92 = arith.select %89, %87, %91 : vector<16x32xi1>, vector<16x32xf32>
    %93 = arith.addf %0, %92 : vector<16x32xf32>
    %c3 = arith.constant 3 : index
    %c0_31 = arith.constant 0 : index
    %c0_32 = arith.constant 0 : index
    %94 = vector.load %arg3[%c3, %c0_31, %c0_32] : memref<9x160x96xbf16, #tpu.memory_space<vmem>>, vector<1x32x64xbf16>
    %95 = vector.shape_cast %94 : vector<1x32x64xbf16> to vector<32x64xbf16>
    %c4 = arith.constant 4 : index
    %c0_33 = arith.constant 0 : index
    %c0_34 = arith.constant 0 : index
    %96 = vector.load %arg3[%c4, %c0_33, %c0_34] : memref<9x160x96xbf16, #tpu.memory_space<vmem>>, vector<1x160x96xbf16>
    %97 = vector.shape_cast %96 : vector<1x160x96xbf16> to vector<160x96xbf16>
    %c5 = arith.constant 5 : index
    %c0_35 = arith.constant 0 : index
    %c0_36 = arith.constant 0 : index
    %98 = vector.load %arg3[%c5, %c0_35, %c0_36] : memref<9x160x96xbf16, #tpu.memory_space<vmem>>, vector<1x32x32xbf16>
    %99 = vector.shape_cast %98 : vector<1x32x32xbf16> to vector<32x32xbf16>
    %100 = vector.extract_strided_slice %3 {offsets = [3, 0], sizes = [1, 32], strides = [1, 1]} : vector<9x32xf32> to vector<1x32xf32>
    %101 = vector.extract_strided_slice %3 {offsets = [4, 0], sizes = [1, 32], strides = [1, 1]} : vector<9x32xf32> to vector<1x32xf32>
    %102 = vector.extract_strided_slice %3 {offsets = [5, 0], sizes = [1, 32], strides = [1, 1]} : vector<9x32xf32> to vector<1x32xf32>
    %103 = arith.truncf %93 : vector<16x32xf32> to vector<16x32xbf16>
    %cst_37 = arith.constant dense<0.000000e+00> : vector<16x64xf32>
    %104 = tpu.matmul %103, %95, %cst_37 {dimension_numbers = #tpu.dot_dimension_numbers<[1], [0], [0], [1], [0, 0, 1, 1], [], []>} : vector<16x32xbf16>, vector<32x64xbf16>, vector<16x64xf32> -> vector<16x64xf32>
    %105 = vector.extract_strided_slice %104 {offsets = [0, 0], sizes = [16, 32], strides = [1, 1]} : vector<16x64xf32> to vector<16x32xf32>
    %106 = vector.extract_strided_slice %104 {offsets = [0, 32], sizes = [16, 32], strides = [1, 1]} : vector<16x64xf32> to vector<16x32xf32>
    %107 = vector.broadcast %100 : vector<1x32xf32> to vector<16x32xf32>
    %108 = arith.addf %106, %107 : vector<16x32xf32>
    %109 = arith.mulf %105, %105 : vector<16x32xf32>
    %110 = tpu.concatenate %105, %109 in 1 : vector<16x32xf32>, vector<16x32xf32> -> vector<16x64xf32>
    %111 = arith.truncf %110 : vector<16x64xf32> to vector<16x64xbf16>
    %cst_38 = arith.constant dense<0.000000e+00> : vector<16x64xf32>
    %112 = tpu.matmul %19, %111, %cst_38 {dimension_numbers = #tpu.dot_dimension_numbers<[1], [0], [0], [1], [0, 0, 1, 1], [], []>} : vector<16x16xbf16>, vector<16x64xbf16>, vector<16x64xf32> -> vector<16x64xf32>
    %113 = vector.extract_strided_slice %112 {offsets = [0, 0], sizes = [16, 32], strides = [1, 1]} : vector<16x64xf32> to vector<16x32xf32>
    %114 = vector.broadcast %7 : vector<16x1xf32> to vector<16x32xf32>
    %115 = arith.mulf %113, %114 : vector<16x32xf32>
    %116 = vector.extract_strided_slice %112 {offsets = [0, 32], sizes = [16, 32], strides = [1, 1]} : vector<16x64xf32> to vector<16x32xf32>
    %117 = vector.broadcast %7 : vector<16x1xf32> to vector<16x32xf32>
    %118 = arith.mulf %116, %117 : vector<16x32xf32>
    %119 = arith.mulf %115, %115 : vector<16x32xf32>
    %120 = arith.subf %118, %119 : vector<16x32xf32>
    %cst_39 = arith.constant 0.000000e+00 : f32
    %121 = vector.broadcast %cst_39 : f32 to vector<16x32xf32>
    %122 = arith.maximumf %120, %121 : vector<16x32xf32>
    %123 = arith.addf %115, %108 : vector<16x32xf32>
    %cst_40 = arith.constant 9.99999974E-6 : f32
    %124 = vector.broadcast %cst_40 : f32 to vector<16x32xf32>
    %125 = arith.addf %122, %124 : vector<16x32xf32>
    %126 = math.sqrt %125 : vector<16x32xf32>
    %cst_41 = arith.constant 0.000000e+00 : f32
    %127 = vector.broadcast %cst_41 : f32 to vector<16x32xf32>
    %128 = arith.subf %127, %105 : vector<16x32xf32>
    %129 = tpu.concatenate %105, %128 in 1 : vector<16x32xf32>, vector<16x32xf32> -> vector<16x64xf32>
    %130 = vector.shape_cast %129 : vector<16x64xf32> to vector<1x16x64xf32>
    %131 = vector.shape_cast %18 : vector<16x16xf32> to vector<16x16x1xf32>
    %132 = vector.broadcast %130 : vector<1x16x64xf32> to vector<16x16x64xf32>
    %133 = vector.broadcast %131 : vector<16x16x1xf32> to vector<16x16x64xf32>
    %134 = arith.addf %132, %133 : vector<16x16x64xf32>
    %cst_42 = arith.constant dense<0xFF800000> : vector<16x64xf32>
    %135 = vector.multi_reduction <maximumf>, %134, %cst_42 [1] : vector<16x16x64xf32> to vector<16x64xf32>
    %136 = vector.extract_strided_slice %135 {offsets = [0, 0], sizes = [16, 32], strides = [1, 1]} : vector<16x64xf32> to vector<16x32xf32>
    %137 = arith.addf %136, %108 : vector<16x32xf32>
    %138 = vector.extract_strided_slice %135 {offsets = [0, 32], sizes = [16, 32], strides = [1, 1]} : vector<16x64xf32> to vector<16x32xf32>
    %cst_43 = arith.constant 0.000000e+00 : f32
    %139 = vector.broadcast %cst_43 : f32 to vector<16x32xf32>
    %140 = arith.subf %139, %138 : vector<16x32xf32>
    %141 = arith.addf %140, %108 : vector<16x32xf32>
    %142 = tpu.concatenate %93, %123, %137, %141, %126 in 1 : vector<16x32xf32>, vector<16x32xf32>, vector<16x32xf32>, vector<16x32xf32>, vector<16x32xf32> -> vector<16x160xf32>
    %143 = arith.truncf %142 : vector<16x160xf32> to vector<16x160xbf16>
    %cst_44 = arith.constant dense<0.000000e+00> : vector<16x96xf32>
    %144 = tpu.matmul %143, %97, %cst_44 {dimension_numbers = #tpu.dot_dimension_numbers<[1], [0], [0], [1], [0, 0, 1, 1], [], []>} : vector<16x160xbf16>, vector<160x96xbf16>, vector<16x96xf32> -> vector<16x96xf32>
    %145 = vector.extract_strided_slice %144 {offsets = [0, 0], sizes = [16, 32], strides = [1, 1]} : vector<16x96xf32> to vector<16x32xf32>
    %146 = vector.broadcast %101 : vector<1x32xf32> to vector<16x32xf32>
    %147 = arith.addf %146, %145 : vector<16x32xf32>
    %148 = vector.extract_strided_slice %144 {offsets = [0, 32], sizes = [16, 32], strides = [1, 1]} : vector<16x96xf32> to vector<16x32xf32>
    %149 = vector.broadcast %12 : vector<16x1xf32> to vector<16x32xf32>
    %150 = arith.mulf %149, %148 : vector<16x32xf32>
    %151 = arith.addf %147, %150 : vector<16x32xf32>
    %152 = vector.extract_strided_slice %144 {offsets = [0, 64], sizes = [16, 32], strides = [1, 1]} : vector<16x96xf32> to vector<16x32xf32>
    %153 = vector.broadcast %14 : vector<16x1xf32> to vector<16x32xf32>
    %154 = arith.mulf %153, %152 : vector<16x32xf32>
    %155 = arith.addf %151, %154 : vector<16x32xf32>
    %156 = vector.broadcast %2 : vector<16x1xf32> to vector<16x32xf32>
    %157 = arith.mulf %155, %156 : vector<16x32xf32>
    %158 = arith.truncf %157 : vector<16x32xf32> to vector<16x32xbf16>
    %cst_45 = arith.constant dense<0.000000e+00> : vector<16x32xf32>
    %159 = tpu.matmul %158, %99, %cst_45 {dimension_numbers = #tpu.dot_dimension_numbers<[1], [0], [0], [1], [0, 0, 1, 1], [], []>} : vector<16x32xbf16>, vector<32x32xbf16>, vector<16x32xf32> -> vector<16x32xf32>
    %160 = vector.broadcast %102 : vector<1x32xf32> to vector<16x32xf32>
    %161 = arith.addf %159, %160 : vector<16x32xf32>
    %cst_46 = arith.constant 0.000000e+00 : f32
    %162 = vector.broadcast %cst_46 : f32 to vector<16x32xf32>
    %163 = arith.cmpf ogt, %161, %162 : vector<16x32xf32>
    %cst_47 = arith.constant 0.00999999977 : f32
    %164 = vector.broadcast %cst_47 : f32 to vector<16x32xf32>
    %165 = arith.mulf %164, %161 : vector<16x32xf32>
    %166 = arith.select %163, %161, %165 : vector<16x32xi1>, vector<16x32xf32>
    %167 = arith.addf %93, %166 : vector<16x32xf32>
    %cst_48 = arith.constant dense<0.000000e+00> : vector<32xf32>
    %168 = vector.multi_reduction <add>, %167, %cst_48 [0] : vector<16x32xf32> to vector<32xf32>
    %169 = vector.shape_cast %168 : vector<32xf32> to vector<1x32xf32>
    %cst_49 = arith.constant 1.600000e+01 : f32
    %170 = vector.broadcast %cst_49 : f32 to vector<1x32xf32>
    %171 = arith.divf %169, %170 : vector<1x32xf32>
    %172 = arith.truncf %171 : vector<1x32xf32> to vector<1x32xbf16>
    %c6 = arith.constant 6 : index
    %c0_50 = arith.constant 0 : index
    %c0_51 = arith.constant 0 : index
    %173 = vector.load %arg3[%c6, %c0_50, %c0_51] : memref<9x160x96xbf16, #tpu.memory_space<vmem>>, vector<1x32x16xbf16>
    %174 = vector.shape_cast %173 : vector<1x32x16xbf16> to vector<32x16xbf16>
    %cst_52 = arith.constant dense<0.000000e+00> : vector<1x16xf32>
    %175 = tpu.matmul %172, %174, %cst_52 {dimension_numbers = #tpu.dot_dimension_numbers<[1], [0], [0], [1], [0, 0, 1, 1], [], []>} : vector<1x32xbf16>, vector<32x16xbf16>, vector<1x16xf32> -> vector<1x16xf32>
    %176 = vector.extract_strided_slice %3 {offsets = [6, 0], sizes = [1, 16], strides = [1, 1]} : vector<9x32xf32> to vector<1x16xf32>
    %177 = arith.addf %175, %176 : vector<1x16xf32>
    %cst_53 = arith.constant 0.000000e+00 : f32
    %178 = vector.broadcast %cst_53 : f32 to vector<1x16xf32>
    %179 = arith.maximumf %177, %178 : vector<1x16xf32>
    %180 = arith.truncf %179 : vector<1x16xf32> to vector<1x16xbf16>
    %c7 = arith.constant 7 : index
    %c0_54 = arith.constant 0 : index
    %c0_55 = arith.constant 0 : index
    %181 = vector.load %arg3[%c7, %c0_54, %c0_55] : memref<9x160x96xbf16, #tpu.memory_space<vmem>>, vector<1x16x8xbf16>
    %182 = vector.shape_cast %181 : vector<1x16x8xbf16> to vector<16x8xbf16>
    %cst_56 = arith.constant dense<0.000000e+00> : vector<1x8xf32>
    %183 = tpu.matmul %180, %182, %cst_56 {dimension_numbers = #tpu.dot_dimension_numbers<[1], [0], [0], [1], [0, 0, 1, 1], [], []>} : vector<1x16xbf16>, vector<16x8xbf16>, vector<1x8xf32> -> vector<1x8xf32>
    %184 = vector.extract_strided_slice %3 {offsets = [7, 0], sizes = [1, 8], strides = [1, 1]} : vector<9x32xf32> to vector<1x8xf32>
    %185 = arith.addf %183, %184 : vector<1x8xf32>
    %cst_57 = arith.constant 0.000000e+00 : f32
    %186 = vector.broadcast %cst_57 : f32 to vector<1x8xf32>
    %187 = arith.maximumf %185, %186 : vector<1x8xf32>
    %188 = arith.truncf %187 : vector<1x8xf32> to vector<1x8xbf16>
    %c8 = arith.constant 8 : index
    %c0_58 = arith.constant 0 : index
    %c0_59 = arith.constant 0 : index
    %189 = vector.load %arg3[%c8, %c0_58, %c0_59] : memref<9x160x96xbf16, #tpu.memory_space<vmem>>, vector<1x8x1xbf16>
    %190 = vector.shape_cast %189 : vector<1x8x1xbf16> to vector<8x1xbf16>
    %cst_60 = arith.constant dense<0.000000e+00> : vector<1x1xf32>
    %191 = tpu.matmul %188, %190, %cst_60 {dimension_numbers = #tpu.dot_dimension_numbers<[1], [0], [0], [1], [0, 0, 1, 1], [], []>} : vector<1x8xbf16>, vector<8x1xbf16>, vector<1x1xf32> -> vector<1x1xf32>
    %192 = vector.extract_strided_slice %3 {offsets = [8, 0], sizes = [1, 1], strides = [1, 1]} : vector<9x32xf32> to vector<1x1xf32>
    %193 = arith.addf %191, %192 : vector<1x1xf32>
    %c0_61 = arith.constant 0 : index
    %c0_62 = arith.constant 0 : index
    %194 = vector.load %arg5[%c0_61, %c0_62] : memref<1x1xf32, #tpu.memory_space<vmem>>, vector<1x1xf32>
    tpu.vector_store %arg5[%c0_61, %c0_62], %193 {strides = array<i32>} : memref<1x1xf32, #tpu.memory_space<vmem>>, vector<1x1xf32>,
    return
  }
}

</mosaic_0001>

<bundles_post_ra>
// kernel: tpu_custom_call.1
= control target key start
LH: loop header
LB: loop body
LE: loop exit
PB: predicated region body
PF: predicated region fallthrough
CT: control target
= control target key end

     0   :  { %10 = vsyncpa [#allocation3], 0  ;;  %s3458_s0 = inlined_call_operand.vmem [shape: f32[16,32], index: 0, kind: input, shape index: {}]   ;;  %s3459_s1 = inlined_call_operand.hbm [shape: f32[16,16], index: 1, kind: input, shape index: {}]   ;;  %s3460_s2 = inlined_call_operand.vmem [shape: f32[16,1], index: 2, kind: input, shape index: {}]   ;;  %s3461_s3 = inlined_call_operand.hbm [shape: bf16[9,160,96], index: 3, kind: input, shape index: {}]   ;;  %s3462_s4 = inlined_call_operand.vmem [shape: f32[9,32], index: 4, kind: input, shape index: {}]   ;;  %s3463_s5 = inlined_call_operand.hbm [shape: f32[1,1], index: 5, kind: output, shape index: {}]  }
   0x1   :  { %11 = vsyncpa [#allocation6], 0 }
   0x2   :  { %12 = vsyncpa [#allocation4], 0  ;;  %s2469_s18 = smov [#allocation2]   ;;  %s2397_s22 = scalar_lea.hbm %s3459_s1, 256 }
   0x3   :  { %s20_s19 = sshll.u32 %s2469_s18, 4  ;;  %p2398_p0 = scmp.ne.s32.totalorder %s3459_s1, %s2397_s22  ;;  %s21_s19 = int_to_ptr.vmem [resolvable:$true] %s20_s19 }
   0x4   :  { %p2401_p1 = scmp.lt.u32.totalorder %s2397_s22, %s3459_s1 }
   0x6   :  { %p2403_p2 = pnand %p2401_p1, %p2398_p0 }
   0x8   :  { %2406 = shalt.err (!%p2403_p2)
}
   0x9   :  { %s2407_s27 = scalar_lea.vmem %s21_s19, 256  ;;  %p2412_p4 = scmp.lt.s32.totalorder %s21_s19, %s21_s19 }
   0xa   :  { %p2408_p3 = scmp.ne.s32.totalorder %s21_s19, %s2407_s27  ;;  %p2413_p5 = scmp.lt.s32.totalorder %s2407_s27, %s2407_s27 }
   0xc   :  { %p2414_p6 = por %p2413_p5, %p2412_p4 }
   0xe   :  { %p2415_p7 = pnand %p2414_p6, %p2408_p3 }
  0x10   :  { %2418 = shalt.err (!%p2415_p7)
}
  0x11   :  { %s2470_s28 = smov 128   ;;  %s2471_s29 = smov 8  }
  0x12   :  { %26 = dma.hbm_to_vmem [thread:$0]  %s3459_s1, 256, %s21_s19, [#allocation3], %s2470_s28, %s2470_s28, %s2471_s29  }
  0x13   :  { %s2472_s7 = smov [#allocation5]   ;;  %s2419_s11 = scalar_lea.hbm %s3461_s3, 11520 }
  0x14   :  { %s34_s8 = sshll.u32 %s2472_s7, 4  ;;  %p2420_p8 = scmp.ne.s32.totalorder %s3461_s3, %s2419_s11  ;;  %s35_s8 = int_to_ptr.vmem [resolvable:$true] %s34_s8 }
  0x15   :  { %p2423_p9 = scmp.lt.u32.totalorder %s2419_s11, %s3461_s3 }
  0x17   :  { %p2425_p10 = pnand %p2423_p9, %p2420_p8 }
  0x19   :  { %2428 = shalt.err (!%p2425_p10)
}
  0x1a   :  { %s2429_s16 = scalar_lea.vmem %s35_s8, 11520  ;;  %p2434_p12 = scmp.lt.s32.totalorder %s35_s8, %s35_s8 }
  0x1b   :  { %p2430_p11 = scmp.ne.s32.totalorder %s35_s8, %s2429_s16  ;;  %p2435_p13 = scmp.lt.s32.totalorder %s2429_s16, %s2429_s16 }
  0x1d   :  { %p2436_p0 = por %p2435_p13, %p2434_p12 }
  0x1f   :  { %p2437_p1 = pnand %p2436_p0, %p2430_p11 }
  0x21   :  { %2440 = shalt.err (!%p2437_p1)
}
  0x22   :  { %s2473_s1 = smov 64   ;;  %s2474_s17 = smov 4  }
  0x23   :  { %40 = dma.hbm_to_vmem [thread:$0]  %s3461_s3, 11520, %s35_s8, [#allocation6], %s2473_s1, %s2473_s1, %s2474_s17  }
  0x24   :  { %2463 = dma.done.wait [#allocation3], 256  }
  0x25   :  { %2464 = vsyncadd [#allocation3], 4294967040 }
  0x26   :  { %2465 = dma.done.wait [#allocation6], 11520  }
  0x27   :  { %2466 = vsyncadd [#allocation6], 4294955776  ;;  %v3464_v0 = vmov 0.0   ;;  %vm2476_vm0 = vmmov 0   ;;  %v174_v1 = vlaneseq  ;;  %v2342_v2 = vld [vmem:[#allocation5] sm:$0xff]   ;;  %vm58_vm1 = vcmask 130048  }
  0x28   :  { %2214 = vmatprep.subr.bf16.mxu0 %v3464_v0  ;;  %2218 = vmatprep.mubr.msk.bf16.mxu0 %vm2476_vm0, %v3464_v0  ;;  %v2343_v3 = vld [vmem:[#allocation5 + $0x8] sm:$0xff]   ;;  %v50_v4 = vld [vmem:[%s3458_s0] sm:$0xff]  ;;  %v51_v5 = vld [vmem:[%s3458_s0 + $0x8] sm:$0xff]  ;;  %vm129_vm2 = vcmask 261120   ;;  %s2477_s25 = smov 32   ;;  %s2478_s26 = smov 96  }
  0x29   :  { %2222 = vmatprep.subr.bf16.mxu1 %v3464_v0  ;;  %2224 = vmatprep.mubr.msk.bf16.mxu1 %vm2476_vm0, %v3464_v0  ;;  %v2549_v6 = vld [vmem:[#allocation2 + $0x8] sm:$0xff]  ;;  %v2551_v7 = vshrl.u32 %v174_v1, 7  ;;  %v116_v9 = vpack.c.bf16 %v51_v5, %v50_v4  ;;  %v56_v11 = vld [vmem:[%s3462_s4] sm:$0xff]  ;;  %vm503_vm3 = vcmask 523264   ;;  %vm793_vm4 = vcmask 1041409   ;;  %s2480_s14 = smov [#allocation7]  }
  0x2a   :  { %2215 = vmatpush3.bf16.msra.mxu0 %v2342_v2  ;;  %v62_v8 = vsel %vm58_vm1, %v2549_v6, 0.0  ;;  %v2565_v13 = vld [vmem:[#allocation2] sm:$0xff]  ;;  %v2148_v21 = vadd.f32 -1.0, %v2549_v6  ;;  %vm796_vm5 = vcmask 1042434   ;;  %vm799_vm6 = vcmask 1043459   ;;  %s2137_s15 = sshll.u32 %s2480_s14, 4  ;;  %s2138_s15 = int_to_ptr.vmem [resolvable:$true] %s2137_s15 }
  0x2b   :  { %2216 = vmatprep.subr.bf16.mxu0 %v3464_v0  ;;  %63 = vadd.xlane.f32.xlu1 %v62_v8  ;;  %v176_v10 = vsub.s32 0, %v2551_v7  ;;  %v2147_v14 = vadd.f32 -1.0, %v2565_v13  ;;  %v2569_v16 = vsub.s32 1, %v2551_v7  ;;  %v2586_v29 = vsub.s32 2, %v2551_v7  ;;  %s2441_s16 = scalar_lea.vmem %s2138_s15, 16  ;;  %p2446_p3 = scmp.lt.s32.totalorder %s2138_s15, %s2138_s15 }
  0x2c   :  { %v84_v27 = vmul.f32 1e+30, %v2148_v21  ;;  %v2591_v33 = vsub.s32 3, %v2551_v7  ;;  %v59_v34 = vsel %vm58_vm1, %v2565_v13, 0.0  ;;  %v2598_v38 = vsub.s32 4, %v2551_v7  ;;  %p2442_p2 = scmp.ne.s32.totalorder %s2138_s15, %s2441_s16 }
  0x2d   :  { %v177_v12 = vrot.slane %v56_v11, %v176_v10  ;;  %v83_v15 = vmul.f32 1e+30, %v2147_v14  ;;  %v2603_v41 = vsub.s32 5, %v2551_v7  ;;  %v363_v44 = vsub.s32 6, %v2551_v7 }
  0x2e   :  { %2217 = vmatpush3.bf16.msra.mxu0 %v2343_v3  ;;  %v397_v28 = vrot.slane %v84_v27, %v2569_v16  ;;  %v408_v31 = vrot.slane %v84_v27, %v2586_v29  ;;  %v386_v36 = vrot.slane %v84_v27, %v176_v10  ;;  %v419_v37 = vrot.slane %v84_v27, %v2591_v33 }
  0x2f   :  { %2228 = vmatprep.subr.bf16.mxu0 %v3464_v0  ;;  %v309_v23 = vrot.slane %v83_v15, %v2569_v16  ;;  %v320_v30 = vrot.slane %v83_v15, %v2586_v29  ;;  %v298_v32 = vrot.slane %v83_v15, %v176_v10  ;;  %v331_v35 = vrot.slane %v83_v15, %v2591_v33 }
  0x30   :  { %3497 = vst [vmem:[#allocation11_spill] sm:$0xff] %v2598_v38  ;;  %v342_v39 = vrot.slane %v83_v15, %v2598_v38  ;;  %v430_v40 = vrot.slane %v84_v27, %v2598_v38  ;;  %3498 = vst [vmem:[#allocation12_spill] sm:$0xff] %v2603_v41  ;;  %v353_v42 = vrot.slane %v83_v15, %v2603_v41  ;;  %v374_v47 = vsub.s32 7, %v2551_v7 }
  0x31   :  { %2219 = vmatmul.mubr.msk.bf16.vlgmr.msra.gmra.mrb[0].mxu0 %vm129_vm2, %v116_v9  ;;  %v441_v43 = vrot.slane %v84_v27, %v2603_v41  ;;  %v364_v45 = vrot.slane %v83_v15, %v363_v44  ;;  %v452_v46 = vrot.slane %v84_v27, %v363_v44  ;;  %v2657_v8 = vpack.c.bf16 %v2549_v6, %v2565_v13 }
  0x32   :  { %2232 = vmatprep.mubr.msk.bf16.mxu0 %vm2476_vm0, %v3464_v0  ;;  %v375_v48 = vrot.slane %v83_v15, %v374_v47  ;;  %v463_v49 = vrot.slane %v84_v27, %v374_v47  ;;  %vm802_vm7 = vcmask 1044484   ;;  %vm805_vm8 = vcmask 1045509  }
  0x33   :  { %3500 = vst [vmem:[#allocation14_spill] sm:$0xff] %v2657_v8  ;;  %vm808_vm9 = vcmask 1046534   ;;  %vm811_vm10 = vcmask 1047559   ;;  %vm895_vm15 = vcmask 785408  }
  0x3c   :  { %179 = vrot.lane.b32.xlu1 %v177_v12, %s2477_s25 }
  0xb8   :  { %v2609_v50 = vpop.xlane.xlu1 %63 }
  0xbc   :  { %v180_v52 = vpop.permute.xlu1 %179 }
 0x104   :  { %v2571_v17 = vpop.f32.mrb[0].mxu0 }
 0x105   :  { %v2220_v18 = vpop.f32.mrb[1].mxu0  ;;  %v283_v19 = vsub.f32 0.0, %v2571_v17  ;;  %v184_v24 = vmul.f32 %v2571_v17, %v2571_v17  ;;  %v2631_v57 = vadd.f32 %v180_v52, %v2571_v17 }
 0x106   :  { %v2574_v20 = vpop.f32.mrb[2].mxu0 }
 0x107   :  { %287 = vrot.lane.b32.xlu1 %v283_v19, %s2477_s25  ;;  %v2221_v22 = vpop.f32.mrb[3].mxu0  ;;  %v185_v25 = vmul.f32 %v2574_v20, %v2574_v20  ;;  %v284_v51 = vsub.f32 0.0, %v2574_v20  ;;  %v2614_v53 = vadd.f32 %v180_v52, %v2574_v20  ;;  %v3468_v58 = vrot.slane %v2631_v57, 1 }
 0x108   :  { %v3467_v60 = vrot.slane %v2631_v57, 2  ;;  %v3466_v2 = vrot.slane %v2631_v57, 3 }
 0x109   :  { %v2290_v26 = vpack.i.bf16 %v185_v25, %v184_v24  ;;  %v3471_v54 = vrot.slane %v2614_v53, 1  ;;  %v3470_v55 = vrot.slane %v2614_v53, 2  ;;  %v3469_v56 = vrot.slane %v2614_v53, 3 }
 0x10b   :  { %311 = vbcast.lane.b32.xlu1 %v309_v23, 256  ;;  %2291 = vrot.lane.b32.xlu0 %v2290_v26, %s2477_s25 }
 0x10f   :  { %315 = vbcast.lane.b32.xlu1 %v309_v23, 264 }
 0x113   :  { %403 = vbcast.lane.b32.xlu1 %v397_v28, 264 }
 0x117   :  { %322 = vbcast.lane.b32.xlu1 %v320_v30, 256 }
 0x11b   :  { %326 = vbcast.lane.b32.xlu1 %v320_v30, 264 }
 0x11f   :  { %410 = vbcast.lane.b32.xlu1 %v408_v31, 256 }
 0x123   :  { %414 = vbcast.lane.b32.xlu1 %v408_v31, 264 }
 0x127   :  { %304 = vbcast.lane.b32.xlu1 %v298_v32, 264 }
 0x12a   :  { %60 = vadd.xlane.f32.xlu0 %v59_v34 }
 0x12b   :  { %337 = vbcast.lane.b32.xlu1 %v331_v35, 264 }
 0x12f   :  { %392 = vbcast.lane.b32.xlu1 %v386_v36, 264 }
 0x133   :  { %425 = vbcast.lane.b32.xlu1 %v419_v37, 264 }
 0x137   :  { %348 = vbcast.lane.b32.xlu1 %v342_v39, 264 }
 0x13b   :  { %436 = vbcast.lane.b32.xlu1 %v430_v40, 264 }
 0x13f   :  { %359 = vbcast.lane.b32.xlu1 %v353_v42, 264 }
 0x140   :  { %399 = vbcast.lane.b32.xlu0 %v397_v28, 256 }
 0x143   :  { %447 = vbcast.lane.b32.xlu1 %v441_v43, 264 }
 0x144   :  { %300 = vbcast.lane.b32.xlu0 %v298_v32, 256 }
 0x147   :  { %370 = vbcast.lane.b32.xlu1 %v364_v45, 264 }
 0x148   :  { %333 = vbcast.lane.b32.xlu0 %v331_v35, 256 }
 0x14b   :  { %458 = vbcast.lane.b32.xlu1 %v452_v46, 264 }
 0x14c   :  { %388 = vbcast.lane.b32.xlu0 %v386_v36, 256 }
 0x14f   :  { %381 = vbcast.lane.b32.xlu1 %v375_v48, 264 }
 0x150   :  { %421 = vbcast.lane.b32.xlu0 %v419_v37, 256 }
 0x153   :  { %469 = vbcast.lane.b32.xlu1 %v463_v49, 264 }
 0x154   :  { %344 = vbcast.lane.b32.xlu0 %v342_v39, 256 }
 0x157   :  { %289 = vrot.lane.b32.xlu1 %v284_v51, %s2477_s25 }
 0x158   :  { %432 = vbcast.lane.b32.xlu0 %v430_v40, 256 }
 0x15b   :  { %261 = vrot.lane.b32.xlu1 %v2614_v53, %s2478_s26 }
 0x15c   :  { %355 = vbcast.lane.b32.xlu0 %v353_v42, 256 }
 0x15f   :  { %676 = vrot.lane.b32.xlu1 %v3471_v54, %s2478_s26 }
 0x160   :  { %443 = vbcast.lane.b32.xlu0 %v441_v43, 256 }
 0x163   :  { %678 = vrot.lane.b32.xlu1 %v3470_v55, %s2478_s26 }
 0x164   :  { %366 = vbcast.lane.b32.xlu0 %v364_v45, 256 }
 0x167   :  { %680 = vrot.lane.b32.xlu1 %v3469_v56, %s2478_s26 }
 0x168   :  { %454 = vbcast.lane.b32.xlu0 %v452_v46, 256 }
 0x16c   :  { %377 = vbcast.lane.b32.xlu0 %v375_v48, 256 }
 0x170   :  { %465 = vbcast.lane.b32.xlu0 %v463_v49, 256 }
 0x174   :  { %259 = vrot.lane.b32.xlu0 %v2631_v57, %s2478_s26 }
 0x178   :  { %662 = vrot.lane.b32.xlu0 %v3468_v58, %s2478_s26 }
 0x179   :  { %v288_v59 = vpop.permute.xlu1 %287 }
 0x17a   :  { %v2703_v32 = vsel %vm129_vm2, %v2571_v17, %v288_v59 }
 0x17c   :  { %664 = vrot.lane.b32.xlu0 %v3467_v60, %s2478_s26 }
 0x17d   :  { %v2643_v61 = vpop.permute.xlu1 %311  ;;  %v2292_v62 = vpop.permute.xlu0 %2291 }
 0x17e   :  { %3499 = vst [vmem:[#allocation13_spill] sm:$0xff] %v2643_v61  ;;  %v2294_v63 = vunpack.i.h.bf16 %v2292_v62  ;;  %v2293_v1 = vunpack.i.l.bf16 %v2292_v62  ;;  %v473_v34 = vadd.f32 %v2643_v61, %v2703_v32 }
 0x180   :  { %666 = vrot.lane.b32.xlu0 %v3466_v2, %s2478_s26  ;;  %v194_v3 = vsel %vm129_vm2, %v2571_v17, %v2293_v1  ;;  %v195_v4 = vsel %vm129_vm2, %v2574_v20, %v2294_v63  ;;  %v2728_v49 = vsel %vm503_vm3, %v473_v34, -inf }
 0x181   :  { %v2653_v5 = vpop.permute.xlu1 %315  ;;  %v196_v7 = vpack.c.bf16 %v195_v4, %v194_v3 }
 0x183   :  { %2223 = vmatpush3.bf16.msra.mxu1 %v196_v7 }
 0x185   :  { %v2659_v9 = vpop.permute.xlu1 %403 }
 0x186   :  { %2225 = vmatmul.mubr.msk.bf16.vlgmr.msra.gmra.mrb[0].mxu1 %vm58_vm1, %v2657_v8 }
 0x189   :  { %v2663_v10 = vpop.permute.xlu1 %322 }
 0x18a   :  { %3501 = vst [vmem:[#allocation15_spill] sm:$0xff] %v2663_v10  ;;  %v475_v35 = vadd.f32 %v2663_v10, %v2703_v32 }
 0x18c   :  { %v2731_v51 = vsel %vm503_vm3, %v475_v35, -inf }
 0x18d   :  { %v2665_v11 = vpop.permute.xlu1 %326 }
 0x191   :  { %v2667_v12 = vpop.permute.xlu1 %410 }
 0x192   :  { %3502 = vst [vmem:[#allocation16_spill] sm:$0xff] %v2667_v12  ;;  %v491_v37 = vadd.f32 %v2667_v12, %v2703_v32 }
 0x194   :  { %v594_v63 = vsel %vm503_vm3, %v491_v37, -inf }
 0x195   :  { %v2669_v14 = vpop.permute.xlu1 %414 }
 0x199   :  { %v2671_v15 = vpop.permute.xlu1 %304 }
 0x19d   :  { %v2673_v18 = vpop.permute.xlu1 %337 }
 0x1a1   :  { %v2675_v6 = vpop.permute.xlu1 %392 }
 0x1a5   :  { %v2677_v13 = vpop.permute.xlu1 %425 }
 0x1a9   :  { %v2679_v19 = vpop.permute.xlu1 %348 }
 0x1ad   :  { %v2681_v21 = vpop.permute.xlu1 %436 }
 0x1b1   :  { %v2683_v22 = vpop.permute.xlu1 %359 }
 0x1b5   :  { %v2685_v23 = vpop.permute.xlu1 %447 }
 0x1b7   :  { %v2687_v24 = vpop.xlane.xlu0 %60 }
 0x1b8   :  { %2373 = vrcp.f32 %v2687_v24 }
 0x1b9   :  { %v2689_v25 = vpop.permute.xlu1 %370  ;;  %2375 = vrcp.f32 %v2609_v50 }
 0x1ba   :  { %3503 = vst [vmem:[#allocation17_spill] sm:$0xff] %v2689_v25 }
 0x1bb   :  { %v2691_v26 = vpop.permute.xlu0 %399 }
 0x1bc   :  { %3504 = vst [vmem:[#allocation18_spill] sm:$0xff] %v2691_v26  ;;  %v489_v39 = vadd.f32 %v2691_v26, %v2703_v32 }
 0x1bd   :  { %v2693_v27 = vpop.permute.xlu1 %458 }
 0x1be   :  { %3505 = vst [vmem:[#allocation19_spill] sm:$0xff] %v2693_v27  ;;  %v585_v1 = vsel %vm503_vm3, %v489_v39, -inf }
 0x1bf   :  { %v2695_v28 = vpop.permute.xlu0 %300 }
 0x1c0   :  { %3506 = vst [vmem:[#allocation20_spill] sm:$0xff] %v2695_v28  ;;  %v471_v40 = vadd.f32 %v2695_v28, %v2703_v32 }
 0x1c1   :  { %v2697_v30 = vpop.permute.xlu1 %381 }
 0x1c2   :  { %3507 = vst [vmem:[#allocation21_spill] sm:$0xff] %v2697_v30  ;;  %v2744_v7 = vsel %vm503_vm3, %v471_v40, -inf }
 0x1c3   :  { %v2699_v31 = vpop.permute.xlu0 %333 }
 0x1c4   :  { %3508 = vst [vmem:[#allocation22_spill] sm:$0xff] %v2699_v31  ;;  %v477_v3 = vadd.f32 %v2699_v31, %v2703_v32 }
 0x1c5   :  { %v2709_v36 = vpop.permute.xlu1 %469 }
 0x1c6   :  { %3509 = vst [vmem:[#allocation23_spill] sm:$0xff] %v2709_v36  ;;  %v2769_v2 = vsel %vm503_vm3, %v477_v3, -inf }
 0x1c7   :  { %v2717_v17 = vpop.permute.xlu0 %388 }
 0x1c8   :  { %3510 = vst [vmem:[#allocation24_spill] sm:$0xff] %v2717_v17  ;;  %v487_v45 = vadd.f32 %v2717_v17, %v2703_v32 }
 0x1c9   :  { %v290_v52 = vpop.permute.xlu1 %289 }
 0x1ca   :  { %v2741_v4 = vsel %vm129_vm2, %v2574_v20, %v290_v52  ;;  %v576_v0 = vsel %vm503_vm3, %v487_v45, -inf }
 0x1cb   :  { %v494_v34 = vadd.f32 %v2677_v13, %v2741_v4  ;;  %v2748_v35 = vpop.permute.xlu0 %421  ;;  %v488_v37 = vadd.f32 %v2675_v6, %v2741_v4  ;;  %v490_v39 = vadd.f32 %v2659_v9, %v2741_v4  ;;  %v480_v40 = vadd.f32 %v2679_v19, %v2741_v4 }
 0x1cc   :  { %3511 = vst [vmem:[#allocation25_spill] sm:$0xff] %v2748_v35  ;;  %v493_v20 = vadd.f32 %v2748_v35, %v2703_v32  ;;  %v492_v52 = vadd.f32 %v2669_v14, %v2741_v4  ;;  %v496_v45 = vadd.f32 %v2681_v21, %v2741_v4 }
 0x1cd   :  { %v604_v62 = vsel %vm503_vm3, %v494_v34, -inf  ;;  %v577_v59 = vsel %vm503_vm3, %v488_v37, -inf  ;;  %v2763_v48 = vpop.permute.xlu1 %261  ;;  %v586_v47 = vsel %vm503_vm3, %v490_v39, -inf  ;;  %v482_v37 = vadd.f32 %v2683_v22, %v2741_v4 }
 0x1ce   :  { %v603_v46 = vsel %vm503_vm3, %v493_v20, -inf  ;;  %v578_v44 = vmax.f32 %v576_v0, %v577_v59  ;;  %v587_v43 = vmax.f32 %v585_v1, %v586_v47  ;;  %v595_v34 = vsel %vm503_vm3, %v492_v52, -inf }
 0x1cf   :  { %v605_v60 = vmax.f32 %v603_v46, %v604_v62  ;;  %v2772_v58 = vpop.permute.xlu0 %344  ;;  %v498_v39 = vadd.f32 %v2685_v23, %v2741_v4  ;;  %v596_v55 = vmax.f32 %v594_v63, %v595_v34  ;;  %v541_v0 = vsel %vm503_vm3, %v480_v40, -inf }
 0x1d0   :  { %3512 = vst [vmem:[#allocation26_spill] sm:$0xff] %v2772_v58  ;;  %v579_v42 = vrot.slane %v578_v44, 4  ;;  %v479_v3 = vadd.f32 %v2772_v58, %v2703_v32  ;;  %v588_v56 = vrot.slane %v587_v43, 4  ;;  %v613_v46 = vsel %vm503_vm3, %v496_v45, -inf }
 0x1d1   :  { %v606_v20 = vrot.slane %v605_v60, 4  ;;  %v484_v47 = vadd.f32 %v2689_v25, %v2741_v4  ;;  %v597_v52 = vrot.slane %v596_v55, 4  ;;  %v677_v41 = vpop.permute.xlu1 %676  ;;  %v550_v58 = vsel %vm503_vm3, %v482_v37, -inf }
 0x1d2   :  { %v580_v59 = vmax.f32 %v578_v44, %v579_v42  ;;  %v540_v62 = vsel %vm503_vm3, %v479_v3, -inf  ;;  %v589_v1 = vmax.f32 %v587_v43, %v588_v56  ;;  %v2790_v34 = vsel %vm503_vm3, %v498_v39, -inf }
 0x1d3   :  { %v542_v54 = vmax.f32 %v540_v62, %v541_v0  ;;  %v2786_v38 = vpop.permute.xlu0 %432  ;;  %v607_v63 = vmax.f32 %v605_v60, %v606_v20  ;;  %v598_v42 = vmax.f32 %v596_v55, %v597_v52  ;;  %v2795_v43 = vsel %vm503_vm3, %v484_v47, -inf }
 0x1d4   :  { %3513 = vst [vmem:[#allocation27_spill] sm:$0xff] %v2786_v38  ;;  %v581_v40 = vrot.slane %v580_v59, 2  ;;  %v590_v45 = vrot.slane %v589_v1, 2  ;;  %v495_v25 = vadd.f32 %v2786_v38, %v2703_v32  ;;  %v500_v3 = vadd.f32 %v2693_v27, %v2741_v4 }
 0x1d5   :  { %v543_v44 = vrot.slane %v542_v54, 4  ;;  %v608_v56 = vrot.slane %v607_v63, 2  ;;  %v599_v20 = vrot.slane %v598_v42, 2  ;;  %v486_v55 = vadd.f32 %v2697_v30, %v2741_v4 }
 0x1d6   :  { %v582_v37 = vmax.f32 %v580_v59, %v581_v40  ;;  %v591_v60 = vmax.f32 %v589_v1, %v590_v45  ;;  %v612_v39 = vsel %vm503_vm3, %v495_v25, -inf  ;;  %v679_v40 = vpop.permute.xlu1 %678 }
 0x1d7   :  { %v544_v0 = vmax.f32 %v542_v54, %v543_v44  ;;  %v614_v62 = vmax.f32 %v612_v39, %v613_v46  ;;  %v2800_v31 = vpop.permute.xlu0 %355  ;;  %v609_v38 = vmax.f32 %v607_v63, %v608_v56  ;;  %v600_v47 = vmax.f32 %v598_v42, %v599_v20 }
 0x1d8   :  { %3514 = vst [vmem:[#allocation28_spill] sm:$0xff] %v2800_v31  ;;  %v583_v52 = vrot.slane %v582_v37, 1  ;;  %v592_v8 = vrot.slane %v591_v60, 1  ;;  %v481_v27 = vadd.f32 %v2800_v31, %v2703_v32  ;;  %v631_v54 = vsel %vm503_vm3, %v500_v3, -inf }
 0x1d9   :  { %v545_v59 = vrot.slane %v544_v0, 2  ;;  %v615_v1 = vrot.slane %v614_v62, 4  ;;  %v610_v25 = vrot.slane %v609_v38, 1  ;;  %v601_v63 = vrot.slane %v600_v47, 1 }
 0x1da   :  { %v584_v46 = vmax.f32 %v582_v37, %v583_v52  ;;  %v593_v45 = vmax.f32 %v591_v60, %v592_v8  ;;  %v549_v44 = vsel %vm503_vm3, %v481_v27, -inf  ;;  %v502_v20 = vadd.f32 %v2709_v36, %v2741_v4  ;;  %v681_v36 = vpop.permute.xlu1 %680 }
 0x1db   :  { %v616_v56 = vmax.f32 %v614_v62, %v615_v1  ;;  %v551_v39 = vmax.f32 %v549_v44, %v550_v58  ;;  %v611_v30 = vmax.f32 %v609_v38, %v610_v25  ;;  %v2808_v42 = vpop.permute.xlu0 %443  ;;  %v2813_v61 = vsel %vm503_vm3, %v486_v55, -inf }
 0x1dc   :  { %3515 = vst [vmem:[#allocation29_spill] sm:$0xff] %v2808_v42  ;;  %v728_v31 = vsub.f32 0.0, %v584_v46  ;;  %v729_v10 = vsub.f32 0.0, %v593_v45  ;;  %v713_v35 = vadd.f32 %v677_v41, %v593_v45  ;;  %v2815_v3 = vmax.f32 %v544_v0, %v545_v59 }
 0x1dd   :  { %v617_v8 = vrot.slane %v616_v56, 2  ;;  %v602_v37 = vmax.f32 %v600_v47, %v601_v63  ;;  %v552_v60 = vrot.slane %v551_v39, 4  ;;  %v712_v27 = vadd.f32 %v584_v46, %v2763_v48 }
 0x1de   :  { %v3516_v38 = vrot.slane %v2614_v53, 1  ;;  %v813_v62 = vrot.slane %v713_v35, 7  ;;  %v731_v52 = vsub.f32 0.0, %v611_v30  ;;  %v2823_v55 = vsel %vm503_vm3, %v502_v20, -inf }
 0x1df   :  { %v730_v1 = vsub.f32 0.0, %v602_v37  ;;  %v714_v25 = vadd.f32 %v679_v40, %v602_v37  ;;  %v553_v44 = vmax.f32 %v551_v39, %v552_v60  ;;  %v2820_v41 = vpop.permute.xlu0 %366  ;;  %v760_v0 = vadd.f32 %v728_v31, %v2614_v53 }
 0x1e0   :  { %v761_v58 = vadd.f32 %v729_v10, %v3516_v38  ;;  %3517 = vst [vmem:[#allocation30_spill] sm:$0xff] %v2820_v41  ;;  %v814_v47 = vsel %vm793_vm4, %v813_v62, %v712_v27  ;;  %v715_v46 = vadd.f32 %v681_v36, %v611_v30  ;;  %v2828_v10 = vmax.f32 %v616_v56, %v617_v8 }
 0x1e1   :  { %v3518_v35 = vrot.slane %v2614_v53, 2  ;;  %v815_v63 = vrot.slane %v714_v25, 6  ;;  %v3519_v37 = vrot.slane %v2614_v53, 3  ;;  %v497_v31 = vadd.f32 %v2808_v42, %v2703_v32 }
 0x1e2   :  { %v863_v59 = vrot.slane %v761_v58, 7  ;;  %v817_v60 = vrot.slane %v715_v46, 5  ;;  %v554_v36 = vrot.slane %v553_v44, 2  ;;  %v483_v56 = vadd.f32 %v2820_v41, %v2703_v32 }
 0x1e3   :  { %v762_v40 = vadd.f32 %v730_v1, %v3518_v35  ;;  %v2835_v20 = vadd.f32 %v731_v52, %v3519_v37  ;;  %v816_v30 = vsel %vm796_vm5, %v815_v63, %v814_v47  ;;  %v2842_v8 = vpop.permute.xlu0 %454  ;;  %v621_v58 = vsel %vm503_vm3, %v497_v31, -inf }
 0x1e4   :  { %v864_v39 = vsel %vm793_vm4, %v863_v59, %v760_v0  ;;  %3520 = vst [vmem:[#allocation31_spill] sm:$0xff] %v2842_v8  ;;  %v2845_v38 = vsel %vm799_vm6, %v817_v60, %v816_v30  ;;  %v499_v62 = vadd.f32 %v2842_v8, %v2703_v32  ;;  %v472_v52 = vadd.f32 %v2671_v15, %v2741_v4 }
 0x1e5   :  { %v865_v27 = vrot.slane %v762_v40, 6  ;;  %v623_v0 = vmax.f32 %v621_v58, %v2790_v34  ;;  %v558_v47 = vsel %vm503_vm3, %v483_v56, -inf  ;;  %v474_v40 = vadd.f32 %v2653_v5, %v2741_v4 }
 0x1e6   :  { %v560_v59 = vmax.f32 %v558_v47, %v2795_v43  ;;  %v630_v46 = vsel %vm503_vm3, %v499_v62, -inf  ;;  %v505_v35 = vsel %vm503_vm3, %v472_v52, -inf  ;;  %v476_v34 = vadd.f32 %v2665_v11, %v2741_v4 }
 0x1e7   :  { %v2854_v25 = vsel %vm796_vm5, %v865_v27, %v864_v39  ;;  %v624_v63 = vrot.slane %v623_v0, 4  ;;  %v632_v37 = vmax.f32 %v630_v46, %v631_v54  ;;  %v2863_v60 = vpop.permute.xlu0 %377  ;;  %v506_v39 = vmax.f32 %v2744_v7, %v505_v35 }
 0x1e8   :  { %3521 = vst [vmem:[#allocation32_spill] sm:$0xff] %v2863_v60  ;;  %v2868_v31 = vmax.f32 %v553_v44, %v554_v36  ;;  %v561_v27 = vrot.slane %v560_v59, 4  ;;  %v485_v43 = vadd.f32 %v2863_v60, %v2703_v32  ;;  %v514_v30 = vsel %vm503_vm3, %v474_v40, -inf }
 0x1e9   :  { %v625_v56 = vmax.f32 %v623_v0, %v624_v63  ;;  %v633_v58 = vrot.slane %v632_v37, 4  ;;  %v507_v62 = vrot.slane %v506_v39, 4  ;;  %v515_v54 = vmax.f32 %v2728_v49, %v514_v30 }
 0x1ea   :  { %v562_v52 = vmax.f32 %v560_v59, %v561_v27  ;;  %v567_v47 = vsel %vm503_vm3, %v485_v43, -inf  ;;  %v523_v7 = vsel %vm503_vm3, %v476_v34, -inf  ;;  %v478_v44 = vadd.f32 %v2673_v18, %v2741_v4 }
 0x1eb   :  { %v626_v36 = vrot.slane %v625_v56, 2  ;;  %v634_v46 = vmax.f32 %v632_v37, %v633_v58  ;;  %v569_v35 = vmax.f32 %v567_v47, %v2813_v61  ;;  %v2879_v1 = vpop.permute.xlu0 %465  ;;  %v508_v40 = vmax.f32 %v506_v39, %v507_v62 }
 0x1ec   :  { %3522 = vst [vmem:[#allocation33_spill] sm:$0xff] %v2879_v1  ;;  %v563_v0 = vrot.slane %v562_v52, 2  ;;  %v501_v63 = vadd.f32 %v2879_v1, %v2703_v32  ;;  %v516_v49 = vrot.slane %v515_v54, 4  ;;  %v524_v59 = vmax.f32 %v2731_v51, %v523_v7 }
 0x1ed   :  { %v635_v34 = vrot.slane %v634_v46, 2  ;;  %v570_v43 = vrot.slane %v569_v35, 4  ;;  %v509_v30 = vrot.slane %v508_v40, 2  ;;  %v532_v61 = vsel %vm503_vm3, %v478_v44, -inf }
 0x1ee   :  { %v639_v4 = vsel %vm503_vm3, %v501_v63, -inf  ;;  %v517_v37 = vmax.f32 %v515_v54, %v516_v49  ;;  %v525_v58 = vrot.slane %v524_v59, 4  ;;  %v556_v39 = vrot.slane %v2868_v31, 1 }
 0x1ef   :  { %v627_v62 = vmax.f32 %v625_v56, %v626_v36  ;;  %v571_v47 = vmax.f32 %v569_v35, %v570_v43  ;;  %v641_v32 = vmax.f32 %v639_v4, %v2823_v55  ;;  %v2889_v45 = vpop.permute.xlu0 %259  ;;  %v564_v51 = vmax.f32 %v562_v52, %v563_v0 }
 0x1f0   :  { %v510_v7 = vmax.f32 %v508_v40, %v509_v30  ;;  %v518_v27 = vrot.slane %v517_v37, 2  ;;  %v526_v1 = vmax.f32 %v524_v59, %v525_v58  ;;  %v636_v60 = vmax.f32 %v634_v46, %v635_v34 }
 0x1f1   :  { %v572_v8 = vrot.slane %v571_v47, 2  ;;  %v642_v41 = vrot.slane %v641_v32, 4  ;;  %v533_v54 = vmax.f32 %v2769_v2, %v532_v61  ;;  %v3523_v42 = vrot.slane %v2815_v3, 1 }
 0x1f2   :  { %v511_v63 = vrot.slane %v510_v7, 1  ;;  %v519_v49 = vmax.f32 %v517_v37, %v518_v27  ;;  %v527_v44 = vrot.slane %v526_v1, 2  ;;  %v3524_v40 = vrot.slane %v2828_v10, 1 }
 0x1f3   :  { %v2895_v56 = vmax.f32 %v2815_v3, %v3523_v42  ;;  %v573_v55 = vmax.f32 %v571_v47, %v572_v8  ;;  %v643_v36 = vmax.f32 %v641_v32, %v642_v41  ;;  %v663_v35 = vpop.permute.xlu0 %662  ;;  %v534_v52 = vrot.slane %v533_v54, 4 }
 0x1f4   :  { %v2900_v46 = vmax.f32 %v2828_v10, %v3524_v40  ;;  %v628_v0 = vrot.slane %v627_v62, 1  ;;  %v512_v59 = vmax.f32 %v510_v7, %v511_v63  ;;  %v520_v2 = vrot.slane %v519_v49, 1 }
 0x1f5   :  { %v528_v34 = vmax.f32 %v526_v1, %v527_v44  ;;  %v565_v27 = vrot.slane %v564_v51, 1  ;;  %v644_v43 = vrot.slane %v643_v36, 2  ;;  %v535_v30 = vmax.f32 %v533_v54, %v534_v52 }
 0x1f6   :  { %v724_v4 = vsub.f32 0.0, %v2895_v56  ;;  %v637_v42 = vrot.slane %v636_v60, 1  ;;  %v720_v3 = vsub.f32 0.0, %v512_v59  ;;  %v521_v8 = vmax.f32 %v519_v49, %v520_v2 }
 0x1f7   :  { %v529_v41 = vrot.slane %v528_v34, 1  ;;  %v574_v37 = vrot.slane %v573_v55, 1  ;;  %v645_v58 = vmax.f32 %v643_v36, %v644_v43  ;;  %v665_v61 = vpop.permute.xlu0 %664  ;;  %v536_v47 = vrot.slane %v535_v30, 2 }
 0x1f8   :  { %v732_v10 = vsub.f32 0.0, %v2900_v46  ;;  %v704_v32 = vadd.f32 %v512_v59, %v2889_v45  ;;  %v721_v7 = vsub.f32 0.0, %v521_v8  ;;  %v705_v63 = vadd.f32 %v663_v35, %v521_v8 }
 0x1f9   :  { %v530_v1 = vmax.f32 %v528_v34, %v529_v41  ;;  %v646_v44 = vrot.slane %v645_v58, 1  ;;  %v752_v54 = vadd.f32 %v720_v3, %v2631_v57  ;;  %v537_v52 = vmax.f32 %v535_v30, %v536_v47 }
 0x1fa   :  { %v3525_v40 = vrot.slane %v2631_v57, 4  ;;  %v3526_v49 = vrot.slane %v2631_v57, 1  ;;  %v792_v36 = vrot.slane %v705_v63, 7  ;;  %v2911_v17 = vmax.f32 %v2868_v31, %v556_v39 }
 0x1fb   :  { %v722_v43 = vsub.f32 0.0, %v530_v1  ;;  %v706_v28 = vadd.f32 %v665_v61, %v530_v1  ;;  %v538_v26 = vrot.slane %v537_v52, 1  ;;  %v2913_v59 = vmax.f32 %v627_v62, %v628_v0  ;;  %v667_v41 = vpop.permute.xlu0 %666 }
 0x1fc   :  { %v756_v12 = vadd.f32 %v724_v4, %v3525_v40  ;;  %v753_v2 = vadd.f32 %v721_v7, %v3526_v49  ;;  %v2915_v35 = vmax.f32 %v564_v51, %v565_v27  ;;  %v794_v30 = vsel %vm793_vm4, %v792_v36, %v704_v32 }
 0x1fd   :  { %v3527_v3 = vrot.slane %v2631_v57, 2  ;;  %v795_v8 = vrot.slane %v706_v28, 6  ;;  %v539_v47 = vmax.f32 %v537_v52, %v538_v26  ;;  %v725_v7 = vsub.f32 0.0, %v2911_v17 }
 0x1fe   :  { %v849_v34 = vrot.slane %v753_v2, 7  ;;  %v733_v61 = vsub.f32 0.0, %v2913_v59  ;;  %v726_v31 = vsub.f32 0.0, %v2915_v35  ;;  %v2925_v0 = vmax.f32 %v636_v60, %v637_v42 }
 0x1ff   :  { %v754_v4 = vadd.f32 %v722_v43, %v3527_v3  ;;  %v797_v51 = vsel %vm796_vm5, %v795_v8, %v794_v30  ;;  %v723_v27 = vsub.f32 0.0, %v539_v47  ;;  %v707_v32 = vadd.f32 %v667_v41, %v539_v47 }
 0x200   :  { %v850_v39 = vsel %vm793_vm4, %v849_v34, %v752_v54  ;;  %v3528_v63 = vrot.slane %v2614_v53, 4  ;;  %v3529_v26 = vrot.slane %v2631_v57, 5  ;;  %v3530_v40 = vrot.slane %v2614_v53, 5 }
 0x201   :  { %v851_v62 = vrot.slane %v754_v4, 6  ;;  %v734_v54 = vsub.f32 0.0, %v2925_v0  ;;  %v2935_v2 = vmax.f32 %v573_v55, %v574_v37  ;;  %v3531_v60 = vrot.slane %v2631_v57, 3 }
 0x202   :  { %v764_v28 = vadd.f32 %v732_v10, %v3528_v63  ;;  %v757_v1 = vadd.f32 %v725_v7, %v3529_v26  ;;  %v765_v49 = vadd.f32 %v733_v61, %v3530_v40  ;;  %v798_v36 = vrot.slane %v707_v32, 5 }
 0x203   :  { %v852_v52 = vsel %vm796_vm5, %v851_v62, %v850_v39  ;;  %v755_v42 = vadd.f32 %v723_v27, %v3531_v60  ;;  %v3532_v43 = vrot.slane %v2631_v57, 6  ;;  %v855_v10 = vrot.slane %v756_v12, 4 }
 0x204   :  { %v3533_v30 = vrot.slane %v2614_v53, 6  ;;  %v727_v4 = vsub.f32 0.0, %v2935_v2  ;;  %v2944_v8 = vmax.f32 %v645_v58, %v646_v44  ;;  %v2947_v55 = vsel %vm799_vm6, %v798_v36, %v797_v51 }
 0x205   :  { %v758_v34 = vadd.f32 %v726_v31, %v3532_v43  ;;  %v853_v41 = vrot.slane %v755_v42, 5  ;;  %v869_v37 = vrot.slane %v764_v28, 4  ;;  %v3534_v47 = vrot.slane %v2835_v20, 5  ;;  %v2969_v42 = vpop.eup %2373 }
 0x206   :  { %v766_v3 = vadd.f32 %v734_v54, %v3533_v30  ;;  %v857_v61 = vrot.slane %v757_v1, 3  ;;  %v871_v31 = vrot.slane %v765_v49, 3  ;;  %v3535_v12 = vrot.slane %v2631_v57, 7 }
 0x207   :  { %v868_v7 = vsel %vm799_vm6, %v3534_v47, %v2854_v25  ;;  %v735_v62 = vsub.f32 0.0, %v2944_v8  ;;  %v859_v27 = vrot.slane %v758_v34, 2  ;;  %v854_v44 = vsel %vm799_vm6, %v853_v41, %v852_v52 }
 0x208   :  { %v759_v39 = vadd.f32 %v727_v4, %v3535_v12  ;;  %v873_v58 = vrot.slane %v766_v3, 2  ;;  %v3536_v32 = vrot.slane %v2614_v53, 7  ;;  %v856_v20 = vsel %vm802_vm7, %v855_v10, %v854_v44  ;;  %v2972_v10 = vpop.eup %2375  ;;  %v2344_v44 = vld [vmem:[#allocation5 + $0x50] sm:$0xff]  }
 0x209   :  { %v870_v25 = vsel %vm802_vm7, %v869_v37, %v868_v7  ;;  %v858_v26 = vsel %vm805_vm8, %v857_v61, %v856_v20  ;;  %v3537_v47 = vrot.slane %v2631_v57, 4  ;;  %v3538_v7 = vrot.slane %v2614_v53, 4  ;;  %v2349_v20 = vld [vmem:[#allocation5 + $0x78] sm:$0xff]  }
 0x20a   :  { %v861_v51 = vrot.slane %v759_v39, 1  ;;  %v767_v63 = vadd.f32 %v735_v62, %v3536_v32  ;;  %v872_v1 = vsel %vm805_vm8, %v871_v31, %v870_v25  ;;  %v860_v40 = vsel %vm808_vm9, %v859_v27, %v858_v26  ;;  %v2350_v25 = vld [vmem:[#allocation5 + $0x80] sm:$0xff]  }
 0x20b   :  { %v874_v49 = vsel %vm808_vm9, %v873_v58, %v872_v1  ;;  %v3539_v61 = vrot.slane %v2631_v57, 5  ;;  %v3540_v31 = vrot.slane %v2614_v53, 5  ;;  %v3541_v12 = vrot.slane %v2631_v57, 6 }
 0x20c   :  { %v875_v28 = vrot.slane %v767_v63, 1  ;;  %v862_v52 = vsel %vm811_vm10, %v861_v51, %v860_v40  ;;  %v3542_v62 = vrot.slane %v2614_v53, 6  ;;  %v3543_v58 = vrot.slane %v2631_v57, 7  ;;  %v2345_v63 = vld [vmem:[#allocation5 + $0x58] sm:$0xff]   ;;  %v2346_v57 = vld [vmem:[#allocation5 + $0x60] sm:$0xff]   ;;  %v2348_v53 = vld [vmem:[#allocation5 + $0x70] sm:$0xff]  }
 0x20d   :  { %v3495_v51 = vmov 0  }
 0x20e   :  { %v876_v54 = vsel %vm811_vm10, %v875_v28, %v874_v49  ;;  %963 = vmatprep.subr.bf16.mxu1 %v3495_v51  ;;  %2316 = vset.pattern.permute.xlu1 %v3495_v51  ;;  %v2351_v28 = vld [vmem:[#allocation5 + $0x88] sm:$0xff]  }
 0x20f   :  { %v2305_v60 = vpack.i.bf16 %v876_v54, %v862_v52  ;;  %964 = vmatpush1.bf16.msra.mxu1 %v2344_v44  ;;  %2315 = vset.pattern.permute.xlu0 %v3495_v51 }
 0x210   :  { %965 = vmatprep.subr.bf16.mxu1 %v3495_v51 }
 0x213   :  { %966 = vmatpush1.bf16.msra.mxu1 %v2345_v63 }
 0x214   :  { %967 = vmatprep.subr.bf16.mxu1 %v3495_v51 }
 0x217   :  { %968 = vmatpush1.bf16.msra.mxu1 %v2346_v57 }
 0x218   :  { %969 = vmatprep.subr.bf16.mxu1 %v3495_v51 }
 0x259   :  { %v234_v36 = vpop.f32.mrb[0].mxu1 }
 0x25a   :  { %v241_v43 = vmul.f32 %v2969_v42, %v234_v36  ;;  %v2226_v34 = vpop.f32.mrb[1].mxu1 }
 0x25b   :  { %v237_v30 = vpop.f32.mrb[2].mxu1 }
 0x25c   :  { %v242_v3 = vmul.f32 %v2972_v10, %v237_v30  ;;  %v2227_v4 = vpop.f32.mrb[3].mxu1  ;;  %v243_v41 = vmul.f32 %v241_v43, %v241_v43  ;;  %v265_v27 = vadd.f32 %v2889_v45, %v241_v43  ;;  %v2347_v45 = vld [vmem:[#allocation5 + $0x68] sm:$0xff]  }
 0x25d   :  { %970 = vmatpush1.bf16.msra.mxu1 %v2347_v45 }
 0x25e   :  { %247 = vrot.lane.b32.xlu0 %v243_v41, %s2477_s25  ;;  %v244_v37 = vmul.f32 %v242_v3, %v242_v3  ;;  %v266_v39 = vadd.f32 %v2763_v48, %v242_v3  ;;  %971 = vmatprep.subr.bf16.mxu1 %v3495_v51 }
 0x260   :  { %249 = vrot.lane.b32.xlu1 %v244_v37, %s2477_s25  ;;  %v2300_v48 = vpack.i.bf16 %v266_v39, %v265_v27  ;;  %v2352_v39 = vld [vmem:[#allocation5 + $0x90] sm:$0xff]  }
 0x261   :  { %972 = vmatpush1.bf16.msra.mxu1 %v2348_v53 }
 0x262   :  { %668 = vrot.lane.b32.xlu0 %v3537_v47, %s2478_s26  ;;  %973 = vmatprep.subr.bf16.mxu1 %v3495_v51 }
 0x264   :  { %682 = vrot.lane.b32.xlu1 %v3538_v7, %s2478_s26 }
 0x265   :  { %974 = vmatpush1.bf16.msra.mxu1 %v2349_v20 }
 0x266   :  { %670 = vrot.lane.b32.xlu0 %v3539_v61, %s2478_s26  ;;  %975 = vmatprep.subr.bf16.mxu1 %v3495_v51 }
 0x268   :  { %684 = vrot.lane.b32.xlu1 %v3540_v31, %s2478_s26 }
 0x269   :  { %976 = vmatpush1.bf16.msra.mxu1 %v2350_v25 }
 0x26a   :  { %672 = vrot.lane.b32.xlu0 %v3541_v12, %s2478_s26  ;;  %977 = vmatprep.subr.bf16.mxu1 %v3495_v51 }
 0x26c   :  { %686 = vrot.lane.b32.xlu1 %v3542_v62, %s2478_s26 }
 0x26d   :  { %978 = vmatpush1.bf16.msra.mxu1 %v2351_v28 }
 0x26e   :  { %674 = vrot.lane.b32.xlu0 %v3543_v58, %s2478_s26  ;;  %979 = vmatprep.subr.bf16.mxu1 %v3495_v51 }
 0x270   :  { %688 = vrot.lane.b32.xlu1 %v3536_v32, %s2478_s26 }
 0x271   :  { %980 = vmatpush1.bf16.msra.mxu1 %v2352_v39 }
 0x272   :  { %2301 = vrot.lane.b32.xlu0 %v2300_v48, %s2477_s25  ;;  %981 = vmatprep.subr.bf16.mxu1 %v3495_v51 }
 0x276   :  { %2306 = vrot.lane.b32.xlu0 %v2305_v60, %s2473_s1 }
 0x2d0   :  { %v248_v26 = vpop.permute.xlu0 %247 }
 0x2d1   :  { %v253_v1 = vsub.f32 %v241_v43, %v248_v26 }
 0x2d2   :  { %v250_v40 = vpop.permute.xlu1 %249 }
 0x2d3   :  { %v255_v49 = vmax.f32 %v253_v1, 0.0  ;;  %v254_v52 = vsub.f32 %v242_v3, %v250_v40 }
 0x2d4   :  { %v669_v54 = vpop.permute.xlu0 %668 }
 0x2d5   :  { %v267_v60 = vadd.f32 1e-05, %v255_v49  ;;  %v256_v36 = vmax.f32 %v254_v52, 0.0  ;;  %v708_v37 = vadd.f32 %v669_v54, %v2895_v56  ;;  %v3544_v49 = vmov 0.0  }
 0x2d6   :  { %v683_v34 = vpop.permute.xlu1 %682 }
 0x2d7   :  { %2377 = vrsqrt.f32 %v267_v60  ;;  %v268_v30 = vadd.f32 1e-05, %v256_v36  ;;  %v716_v47 = vadd.f32 %v683_v34, %v2900_v46  ;;  %v801_v62 = vrot.slane %v708_v37, 4 }
 0x2d8   :  { %v671_v4 = vpop.permute.xlu0 %670  ;;  %vm271_vm12 = vcmp.eq.f32.partialorder %v267_v60, inf  ;;  %vm273_vm14 = vcmp.eq.f32.partialorder %v267_v60, 0.0 }
 0x2d9   :  { %2379 = vrsqrt.f32 %v268_v30  ;;  %v709_v61 = vadd.f32 %v671_v4, %v2911_v17  ;;  %v819_v27 = vrot.slane %v716_v47, 4  ;;  %v803_v45 = vsel %vm802_vm7, %v801_v62, %v2947_v55  ;;  %v54_v55 = vld [vmem:[%s3460_s2] sm:$0xff] }
 0x2da   :  { %v685_v41 = vpop.permute.xlu1 %684  ;;  %vm278_vm11 = vcmp.eq.f32.partialorder %v268_v30, inf  ;;  %v281_v54 = vand.u32 2147483648, %v268_v30  ;;  %1036 = vperm.xlu0 %2315, %v54_v55   ;;  %vm280_vm13 = vcmp.eq.f32.partialorder %v268_v30, 0.0  ;;  %v274_v4 = vand.u32 2147483648, %v267_v60  ;;  %v2355_v55 = vld [vmem:[#allocation5 + $0xa8] sm:$0xff]  }
 0x2db   :  { %v717_v43 = vadd.f32 %v685_v41, %v2913_v59  ;;  %v804_v32 = vrot.slane %v709_v61, 3  ;;  %v820_v53 = vsel %vm802_vm7, %v819_v27, %v2845_v38  ;;  %v3054_v27 = vld [vmem:[%s3458_s0] sm:$0xff] }
 0x2dc   :  { %v673_v7 = vpop.permute.xlu0 %672 }
 0x2dd   :  { %v710_v3 = vadd.f32 %v673_v7, %v2915_v35  ;;  %v821_v48 = vrot.slane %v717_v43, 3  ;;  %v55_v7 = vld [vmem:[%s3460_s2 + $0x8] sm:$0xff] }
 0x2de   :  { %v687_v31 = vpop.permute.xlu1 %686 }
 0x2df   :  { %v718_v12 = vadd.f32 %v687_v31, %v2925_v0  ;;  %v807_v46 = vrot.slane %v710_v3, 2  ;;  %v2353_v0 = vld [vmem:[#allocation5 + $0x98] sm:$0xff]   ;;  %v822_v28 = vsel %vm805_vm8, %v821_v48, %v820_v53  ;;  %v70_v53 = vadd.f32 1.0, %v2609_v50 }
 0x2e0   :  { %v675_v58 = vpop.permute.xlu0 %674  ;;  %982 = vmatpush1.bf16.msra.mxu1 %v2353_v0 }
 0x2e1   :  { %v2378_v44 = vpop.eup %2377  ;;  %v711_v56 = vadd.f32 %v675_v58, %v2935_v2  ;;  %v823_v63 = vrot.slane %v718_v12, 2  ;;  %v806_v2 = vsel %vm805_vm8, %v804_v32, %v803_v45  ;;  %2250 = vmatprep.subr.bf16.mxu1 %v3544_v49  ;;  %v69_v45 = vadd.f32 1.0, %v2687_v24 }
 0x2e2   :  { %v689_v17 = vpop.permute.xlu1 %688  ;;  %v270_v20 = vmul.f32 %v2378_v44, %v267_v60  ;;  %v809_v1 = vsel %vm808_vm9, %v807_v46, %v806_v2 }
 0x2e3   :  { %v2380_v59 = vpop.eup %2379  ;;  %v810_v35 = vrot.slane %v711_v56, 1  ;;  %v719_v57 = vadd.f32 %v689_v17, %v2944_v8  ;;  %v824_v8 = vsel %vm808_vm9, %v823_v63, %v822_v28  ;;  %2381 = vlog2.f32 %v69_v45 }
 0x2e4   :  { %v277_v25 = vmul.f32 %v2380_v59, %v268_v30  ;;  %v272_v34 = vsel %vm271_vm12, %v267_v60, %v270_v20  ;;  %v2302_v61 = vpop.permute.xlu0 %2301  ;;  %v3047_v60 = vld [vmem:[%s3458_s0 + $0x8] sm:$0xff]  ;;  %2383 = vlog2.f32 %v70_v53 }
 0x2e5   :  { %v825_v26 = vrot.slane %v719_v57, 1  ;;  %v812_v38 = vsel %vm811_vm10, %v810_v35, %v809_v1  ;;  %v275_v37 = vsel %vm273_vm14, %v274_v4, %v272_v34  ;;  %v2304_v43 = vunpack.i.h.bf16 %v2302_v61 }
 0x2e6   :  { %v279_v40 = vsel %vm278_vm11, %v268_v30, %v277_v25  ;;  %v2303_v3 = vunpack.i.l.bf16 %v2302_v61 }
 0x2e7   :  { %v826_v52 = vsel %vm811_vm10, %v825_v26, %v824_v8  ;;  %v282_v41 = vsel %vm280_vm13, %v281_v54, %v279_v40  ;;  %v892_v62 = vsel %vm129_vm2, %v3047_v60, %v2304_v43  ;;  %v2354_v26 = vld [vmem:[#allocation5 + $0xa0] sm:$0xff]   ;;  %v3092_v43 = vld [vmem:[%s3462_s4] sm:$0xff] }
 0x2e8   :  { %v2295_v36 = vpack.i.bf16 %v826_v52, %v812_v38  ;;  %v2310_v47 = vpack.i.bf16 %v282_v41, %v275_v37  ;;  %v2307_v31 = vpop.permute.xlu0 %2306  ;;  %v891_v58 = vsel %vm129_vm2, %v3054_v27, %v2303_v3  ;;  %2229 = vmatpush3.bf16.msra.mxu0 %v2354_v26  ;;  %v1007_v3 = vrot.slane %v3092_v43, %v2569_v16  ;;  %v2356_v16 = vld [vmem:[#allocation5 + $0xf0] sm:$0xff]  }
 0x2e9   :  { %v2309_v44 = vunpack.i.h.bf16 %v2307_v31  ;;  %v2308_v32 = vunpack.i.l.bf16 %v2307_v31  ;;  %2230 = vmatprep.subr.bf16.mxu0 %v3544_v49 }
 0x2ea   :  { %2296 = vrot.lane.b32.xlu1 %v2295_v36, %s2473_s1 }
 0x2ec   :  { %2231 = vmatpush3.bf16.msra.mxu0 %v2355_v55 }
 0x2ed   :  { %v2382_v20 = vpop.eup %2381  ;;  %2236 = vmatprep.subr.bf16.mxu0 %v3544_v49 }
 0x2ee   :  { %2311 = vrot.lane.b32.xlu1 %v2310_v47, %s2478_s26  ;;  %v2384_v25 = vpop.eup %2383  ;;  %v72_v2 = vmul.f32 0.6931472, %v2382_v20 }
 0x2ef   :  { %v74_v28 = vmul.f32 0.6931472, %v2384_v25 }
 0x2f0   :  { %2385 = vrcp.f32 %v72_v2  ;;  %v3067_v1 = vmul.f32 0.8288485, %v72_v2 }
 0x2f1   :  { %2387 = vrcp.f32 %v74_v28  ;;  %v3071_v38 = vmul.f32 0.8288485, %v74_v28 }
 0x2f2   :  { %1041 = vperm.xlu1 %2316, %v55_v7  }
 0x2fa   :  { %v2386_v8 = vpop.eup %2385 }
 0x2fb   :  { %v2388_v52 = vpop.eup %2387  ;;  %v3075_v4 = vmul.f32 1.2064931, %v2386_v8 }
 0x2fc   :  { %v3080_v37 = vmul.f32 1.2064931, %v2388_v52 }
 0x359   :  { %v3087_v61 = vpop.permute.xlu0 %1036 }
 0x35c   :  { %v2297_v12 = vpop.permute.xlu1 %2296 }
 0x35d   :  { %v2299_v30 = vunpack.i.h.bf16 %v2297_v12  ;;  %v2298_v39 = vunpack.i.l.bf16 %v2297_v12 }
 0x35f   :  { %v894_v48 = vsel %vm503_vm3, %v892_v62, %v2299_v30  ;;  %v893_v56 = vsel %vm503_vm3, %v891_v58, %v2298_v39 }
 0x360   :  { %v2312_v46 = vpop.permute.xlu1 %2311  ;;  %v896_v59 = vsel %vm895_vm15, %v893_v56, %v2308_v32  ;;  %v897_v35 = vsel %vm895_vm15, %v894_v48, %v2309_v44 }
 0x361   :  { %v2314_v63 = vunpack.i.h.bf16 %v2312_v46  ;;  %v2313_v17 = vunpack.i.l.bf16 %v2312_v46  ;;  %v898_v0 = vpack.c.bf16 %v897_v35, %v896_v59  ;;  %v2357_v59 = vld [vmem:[#allocation5 + $0xf8] sm:$0xff]   ;;  %v1206_v35 = vrot.slane %v3092_v43, %v2591_v33 }
 0x363   :  { %v899_v57 = vpack.c.bf16 %v2314_v63, %v2313_v17 }
 0x365   :  { %2163 = vmatprep.mubr.msk.bf16.mxu1 %vm129_vm2, %v899_v57  ;;  %v1050_v57 = vrot.slane %v3092_v43, %v2586_v29 }
 0x366   :  { %996 = vmatmul.mubr.bf16.vlgmr.msra.gmra.mrb[4].mxu1 %v898_v0 }
 0x367   :  { %2254 = vmatprep.mubr.msk.bf16.mxu1 %vm2476_vm0, %v3544_v49 }
 0x371   :  { %v3085_v7 = vpop.permute.xlu1 %1041 }
 0x439   :  { %v997_v40 = vpop.f32.mrb[4].mxu1 }
 0x43a   :  { %v1010_v24 = vmul.f32 %v997_v40, %v3067_v1  ;;  %v999_v50 = vpop.f32.mrb[5].mxu1  ;;  %v1022_v41 = vmul.f32 %v997_v40, %v3075_v4  ;;  %v1008_v12 = vadd.f32 %v1007_v3, %v997_v40 }
 0x43b   :  { %v1000_v54 = vpop.f32.mrb[6].mxu1 }
 0x43c   :  { %v1011_v36 = vmul.f32 %v1000_v54, %v3071_v38  ;;  %1014 = vrot.lane.b32.xlu1 %v1010_v24, %s2478_s26  ;;  %v1002_v34 = vpop.f32.mrb[7].mxu1  ;;  %v1023_v47 = vmul.f32 %v1000_v54, %v3080_v37  ;;  %v1009_v62 = vadd.f32 %v1007_v3, %v1000_v54 }
 0x43e   :  { %1016 = vrot.lane.b32.xlu0 %v1011_v36, %s2478_s26 }
 0x440   :  { %1026 = vrot.lane.b32.xlu1 %v1022_v41, %s2473_s1 }
 0x442   :  { %1028 = vrot.lane.b32.xlu0 %v1023_v47, %s2473_s1 }
 0x446   :  { %1208 = vrot.lane.b32.xlu0 %v1206_v35, %s2477_s25 }
 0x4ae   :  { %v1015_v31 = vpop.permute.xlu1 %1014 }
 0x4af   :  { %v1020_v39 = vadd.f32 %v1015_v31, %v1008_v12 }
 0x4b0   :  { %v1017_v30 = vpop.permute.xlu0 %1016 }
 0x4b1   :  { %v1021_v44 = vadd.f32 %v1017_v30, %v1009_v62 }
 0x4b2   :  { %v1027_v58 = vpop.permute.xlu1 %1026 }
 0x4b3   :  { %v1032_v32 = vadd.f32 %v1027_v58, %v1020_v39 }
 0x4b4   :  { %v1029_v48 = vpop.permute.xlu0 %1028 }
 0x4b5   :  { %v1033_v56 = vadd.f32 %v1029_v48, %v1021_v44  ;;  %v1044_v46 = vmul.f32 %v3087_v61, %v1032_v32 }
 0x4b7   :  { %v1045_v63 = vmul.f32 %v3085_v7, %v1033_v56 }
 0x4b9   :  { %v1046_v17 = vpack.c.bf16 %v1045_v63, %v1044_v46 }
 0x4bb   :  { %2233 = vmatmul.mubr.msk.bf16.vlgmr.msra.gmra.mrb[4].mxu0 %vm129_vm2, %v1046_v17 }
 0x4bc   :  { %2240 = vmatprep.mubr.msk.bf16.mxu0 %vm2476_vm0, %v3544_v49  ;;  %2237 = vmatpush3.bf16.msra.mxu0 %v2356_v16 }
 0x4bd   :  { %2238 = vmatprep.subr.bf16.mxu0 %v3544_v49 }
 0x4c0   :  { %2239 = vmatpush3.bf16.msra.mxu0 %v2357_v59 }
 0x4c1   :  { %2244 = vmatprep.subr.bf16.mxu0 %v3544_v49 }
 0x58e   :  { %v1100_v0 = vpop.f32.mrb[4].mxu0 }
 0x58f   :  { %v1101_v45 = vadd.f32 %v1100_v0, %v1050_v57  ;;  %v2234_v53 = vpop.f32.mrb[5].mxu0 }
 0x590   :  { %v1103_v20 = vpop.f32.mrb[6].mxu0 }
 0x591   :  { %vm1107_vm11 = vcmp.gt.f32.partialorder %v1101_v45, 0.0  ;;  %v1109_v25 = vmul.f32 0.01, %v1101_v45  ;;  %v1104_v2 = vadd.f32 %v1103_v20, %v1050_v57  ;;  %v2235_v28 = vpop.f32.mrb[7].mxu0 }
 0x593   :  { %v1111_v26 = vsel %vm1107_vm11, %v1101_v45, %v1109_v25  ;;  %vm1108_vm12 = vcmp.gt.f32.partialorder %v1104_v2, 0.0  ;;  %v1110_v33 = vmul.f32 0.01, %v1104_v2 }
 0x594   :  { %v3109_v40 = vadd.f32 %v3054_v27, %v1111_v26 }
 0x595   :  { %v1112_v8 = vsel %vm1108_vm12, %v1104_v2, %v1110_v33 }
 0x596   :  { %v3112_v55 = vadd.f32 %v3047_v60, %v1112_v8  ;;  %v1209_v60 = vpop.permute.xlu0 %1208 }
 0x598   :  { %v1146_v29 = vpack.c.bf16 %v3112_v55, %v3109_v40 }
 0x59a   :  { %2241 = vmatmul.mubr.msk.bf16.vlgmr.msra.gmra.mrb[8].mxu0 %vm129_vm2, %v1146_v29 }
 0x59b   :  { %2246 = vmatprep.mubr.msk.bf16.mxu0 %vm2476_vm0, %v3544_v49 }
 0x66d   :  { %v1196_v24 = vpop.f32.mrb[8].mxu0 }
 0x66e   :  { %v2242_v50 = vpop.f32.mrb[9].mxu0  ;;  %v1213_v34 = vmul.f32 %v1196_v24, %v1196_v24  ;;  %v1309_v3 = vsub.f32 0.0, %v1196_v24  ;;  %v3127_v12 = vadd.f32 %v1209_v60, %v1196_v24 }
 0x66f   :  { %v1199_v52 = vpop.f32.mrb[10].mxu0  ;;  %v3546_v50 = vld [vmem:[#allocation18_spill] sm:$0xff] }
 0x670   :  { %v2243_v54 = vpop.f32.mrb[11].mxu0  ;;  %v1310_v36 = vsub.f32 0.0, %v1199_v52  ;;  %v1214_v41 = vmul.f32 %v1199_v52, %v1199_v52  ;;  %v3120_v47 = vadd.f32 %v1209_v60, %v1199_v52  ;;  %v1497_v39 = vrot.slane %v3127_v12, 1 }
 0x671   :  { %v1498_v58 = vrot.slane %v3127_v12, 2  ;;  %v1499_v44 = vrot.slane %v3127_v12, 3 }
 0x672   :  { %1315 = vrot.lane.b32.xlu0 %v1310_v36, %s2477_s25  ;;  %v2317_v27 = vpack.i.bf16 %v1214_v41, %v1213_v34  ;;  %v1504_v31 = vrot.slane %v3120_v47, 1  ;;  %v1505_v30 = vrot.slane %v3120_v47, 2  ;;  %v1506_v62 = vrot.slane %v3120_v47, 3  ;;  %v3549_v34 = vld [vmem:[#allocation13_spill] sm:$0xff] }
 0x673   :  { %v3550_v41 = vld [vmem:[#allocation25_spill] sm:$0xff] }
 0x674   :  { %2318 = vrot.lane.b32.xlu1 %v2317_v27, %s2477_s25  ;;  %v3551_v27 = vld [vmem:[#allocation15_spill] sm:$0xff] }
 0x676   :  { %1287 = vrot.lane.b32.xlu0 %v3120_v47, %s2478_s26 }
 0x678   :  { %1313 = vrot.lane.b32.xlu1 %v1309_v3, %s2477_s25 }
 0x67a   :  { %1525 = vrot.lane.b32.xlu0 %v1504_v31, %s2478_s26 }
 0x67c   :  { %1285 = vrot.lane.b32.xlu1 %v3127_v12, %s2478_s26 }
 0x67e   :  { %1527 = vrot.lane.b32.xlu0 %v1505_v30, %s2478_s26 }
 0x680   :  { %1511 = vrot.lane.b32.xlu1 %v1497_v39, %s2478_s26 }
 0x682   :  { %1529 = vrot.lane.b32.xlu0 %v1506_v62, %s2478_s26 }
 0x684   :  { %1513 = vrot.lane.b32.xlu1 %v1498_v58, %s2478_s26 }
 0x688   :  { %1515 = vrot.lane.b32.xlu1 %v1499_v44, %s2478_s26 }
 0x6e4   :  { %v1316_v32 = vpop.permute.xlu0 %1315 }
 0x6e5   :  { %v3155_v48 = vsel %vm129_vm2, %v1199_v52, %v1316_v32 }
 0x6e6   :  { %v2319_v56 = vpop.permute.xlu1 %2318  ;;  %v1338_v46 = vadd.f32 %v3155_v48, %v2675_v6  ;;  %v1340_v63 = vadd.f32 %v3155_v48, %v2659_v9  ;;  %v1322_v17 = vadd.f32 %v3155_v48, %v2671_v15  ;;  %v1342_v16 = vadd.f32 %v3155_v48, %v2669_v14 }
 0x6e7   :  { %v2321_v59 = vunpack.i.h.bf16 %v2319_v56  ;;  %v2320_v35 = vunpack.i.l.bf16 %v2319_v56  ;;  %v1324_v57 = vadd.f32 %v3155_v48, %v2653_v5  ;;  %v1344_v0 = vadd.f32 %v3155_v48, %v2677_v13 }
 0x6e8   :  { %v1426_v45 = vsel %vm503_vm3, %v1338_v46, -inf  ;;  %v1435_v6 = vsel %vm503_vm3, %v1340_v63, -inf  ;;  %v1354_v9 = vsel %vm503_vm3, %v1322_v17, -inf  ;;  %v1444_v53 = vsel %vm503_vm3, %v1342_v16, -inf  ;;  %v3220_v17 = vpop.permute.xlu0 %1287 }
 0x6e9   :  { %v1224_v15 = vsel %vm129_vm2, %v1199_v52, %v2321_v59  ;;  %v1223_v14 = vsel %vm129_vm2, %v1196_v24, %v2320_v35  ;;  %v1363_v20 = vsel %vm503_vm3, %v1324_v57, -inf  ;;  %v1453_v25 = vsel %vm503_vm3, %v1344_v0, -inf  ;;  %v3547_v52 = vld [vmem:[#allocation20_spill] sm:$0xff]  ;;  %v3552_v57 = vld [vmem:[#allocation14_spill] sm:$0xff] }
 0x6ea   :  { %v1225_v5 = vpack.c.bf16 %v1224_v15, %v1223_v14  ;;  %v1314_v2 = vpop.permute.xlu1 %1313  ;;  %v1326_v13 = vadd.f32 %v3155_v48, %v2665_v11  ;;  %v1328_v28 = vadd.f32 %v3155_v48, %v2673_v18  ;;  %v3183_v26 = vadd.f32 %v3155_v48, %v2679_v19  ;;  %v3545_v18 = vld [vmem:[#allocation24_spill] sm:$0xff] }
 0x6eb   :  { %v3186_v33 = vsel %vm129_vm2, %v1196_v24, %v1314_v2  ;;  %v3190_v8 = vadd.f32 %v3155_v48, %v2681_v21  ;;  %v3194_v29 = vadd.f32 %v3155_v48, %v2683_v22  ;;  %v3198_v11 = vadd.f32 %v3155_v48, %v2685_v23  ;;  %v3548_v21 = vld [vmem:[#allocation16_spill] sm:$0xff]  ;;  %v3553_v2 = vld [vmem:[#allocation22_spill] sm:$0xff] }
 0x6ec   :  { %2245 = vmatpush3.bf16.msra.mxu0 %v1225_v5  ;;  %v1337_v19 = vadd.f32 %v3186_v33, %v3545_v18  ;;  %v1339_v24 = vadd.f32 %v3186_v33, %v3546_v50  ;;  %v1321_v54 = vadd.f32 %v3186_v33, %v3547_v52  ;;  %v1341_v36 = vadd.f32 %v3186_v33, %v3548_v21 }
 0x6ed   :  { %v1323_v22 = vadd.f32 %v3186_v33, %v3549_v34  ;;  %v1343_v23 = vadd.f32 %v3186_v33, %v3550_v41  ;;  %v1325_v60 = vadd.f32 %v3186_v33, %v3551_v27  ;;  %v1372_v3 = vsel %vm503_vm3, %v1326_v13, -inf  ;;  %1804 = vmatprep.subr.bf16.mxu0 %v3495_v51 }
 0x6ee   :  { %v1425_v32 = vsel %vm503_vm3, %v1337_v19, -inf  ;;  %v1434_v56 = vsel %vm503_vm3, %v1339_v24, -inf  ;;  %v1353_v46 = vsel %vm503_vm3, %v1321_v54, -inf  ;;  %v1443_v63 = vsel %vm503_vm3, %v1341_v36, -inf }
 0x6ef   :  { %v1427_v16 = vmax.f32 %v1425_v32, %v1426_v45  ;;  %v1436_v59 = vmax.f32 %v1434_v56, %v1435_v6  ;;  %v1355_v35 = vmax.f32 %v1353_v46, %v1354_v9  ;;  %2247 = vmatmul.mubr.msk.bf16.vlgmr.msra.gmra.mrb[12].mxu0 %vm58_vm1, %v3552_v57  ;;  %v1445_v0 = vmax.f32 %v1443_v63, %v1444_v53  ;;  %v1526_v32 = vpop.permute.xlu0 %1525 }
 0x6f0   :  { %v1362_v15 = vsel %vm503_vm3, %v1323_v22, -inf  ;;  %v1452_v14 = vsel %vm503_vm3, %v1343_v23, -inf  ;;  %v1371_v5 = vsel %vm503_vm3, %v1325_v60, -inf  ;;  %v1327_v13 = vadd.f32 %v3186_v33, %v3553_v2 }
 0x6f1   :  { %v1428_v18 = vrot.slane %v1427_v16, 4  ;;  %v1437_v19 = vrot.slane %v1436_v59, 4  ;;  %v1356_v50 = vrot.slane %v1355_v35, 4  ;;  %v1446_v24 = vrot.slane %v1445_v0, 4 }
 0x6f2   :  { %v1364_v45 = vmax.f32 %v1362_v15, %v1363_v20  ;;  %v1454_v6 = vmax.f32 %v1452_v14, %v1453_v25  ;;  %v1373_v9 = vmax.f32 %v1371_v5, %v1372_v3  ;;  %v1380_v52 = vsel %vm503_vm3, %v1327_v13, -inf }
 0x6f3   :  { %v1429_v54 = vmax.f32 %v1427_v16, %v1428_v18  ;;  %v1438_v53 = vmax.f32 %v1436_v59, %v1437_v19  ;;  %v1357_v21 = vmax.f32 %v1355_v35, %v1356_v50  ;;  %v1447_v36 = vmax.f32 %v1445_v0, %v1446_v24  ;;  %v3231_v59 = vpop.permute.xlu1 %1285 }
 0x6f4   :  { %v1365_v34 = vrot.slane %v1364_v45, 4  ;;  %v1455_v22 = vrot.slane %v1454_v6, 4  ;;  %v1374_v41 = vrot.slane %v1373_v9, 4  ;;  %v1381_v23 = vsel %vm503_vm3, %v1328_v28, -inf }
 0x6f5   :  { %v1430_v27 = vrot.slane %v1429_v54, 2  ;;  %v1439_v60 = vrot.slane %v1438_v53, 2  ;;  %v1358_v56 = vrot.slane %v1357_v21, 2  ;;  %v1448_v46 = vrot.slane %v1447_v36, 2 }
 0x6f6   :  { %v1366_v63 = vmax.f32 %v1364_v45, %v1365_v34  ;;  %v1456_v20 = vmax.f32 %v1454_v6, %v1455_v22  ;;  %v1375_v25 = vmax.f32 %v1373_v9, %v1374_v41  ;;  %v1382_v3 = vmax.f32 %v1380_v52, %v1381_v23 }
 0x6f7   :  { %v1431_v57 = vmax.f32 %v1429_v54, %v1430_v27  ;;  %v1440_v15 = vmax.f32 %v1438_v53, %v1439_v60  ;;  %v1359_v16 = vmax.f32 %v1357_v21, %v1358_v56  ;;  %v1449_v35 = vmax.f32 %v1447_v36, %v1448_v46  ;;  %v1528_v21 = vpop.permute.xlu0 %1527  ;;  %v1512_v46 = vpop.permute.xlu1 %1511 }
 0x6f8   :  { %v1367_v0 = vrot.slane %v1366_v63, 2  ;;  %v1457_v14 = vrot.slane %v1456_v20, 2  ;;  %v1376_v5 = vrot.slane %v1375_v25, 2  ;;  %v1383_v2 = vrot.slane %v1382_v3, 4 }
 0x6f9   :  { %v1432_v28 = vrot.slane %v1431_v57, 1  ;;  %v1441_v13 = vrot.slane %v1440_v15, 1  ;;  %v1360_v18 = vrot.slane %v1359_v16, 1  ;;  %v1450_v19 = vrot.slane %v1449_v35, 1 }
 0x6fa   :  { %v1368_v50 = vmax.f32 %v1366_v63, %v1367_v0  ;;  %v1458_v24 = vmax.f32 %v1456_v20, %v1457_v14  ;;  %v1377_v45 = vmax.f32 %v1375_v25, %v1376_v5  ;;  %v1384_v6 = vmax.f32 %v1382_v3, %v1383_v2 }
 0x6fb   :  { %v1433_v9 = vmax.f32 %v1431_v57, %v1432_v28  ;;  %v1442_v52 = vmax.f32 %v1440_v15, %v1441_v13  ;;  %v1361_v54 = vmax.f32 %v1359_v16, %v1360_v18  ;;  %v1451_v53 = vmax.f32 %v1449_v35, %v1450_v19  ;;  %v1530_v18 = vpop.permute.xlu0 %1529 }
 0x6fc   :  { %v1369_v34 = vrot.slane %v1368_v50, 1  ;;  %v1459_v22 = vrot.slane %v1458_v24, 1  ;;  %v1378_v36 = vrot.slane %v1377_v45, 1  ;;  %v1385_v41 = vrot.slane %v1384_v6, 2 }
 0x6fd   :  { %v1561_v23 = vadd.f32 %v1433_v9, %v3220_v17  ;;  %v1577_v27 = vsub.f32 0.0, %v1433_v9  ;;  %v1578_v60 = vsub.f32 0.0, %v1442_v52  ;;  %v1562_v56 = vadd.f32 %v1526_v32, %v1442_v52 }
 0x6fe   :  { %v1569_v51 = vsub.f32 0.0, %v1361_v54  ;;  %v1553_v63 = vadd.f32 %v1361_v54, %v3231_v59  ;;  %v1579_v20 = vsub.f32 0.0, %v1451_v53  ;;  %v1563_v25 = vadd.f32 %v1528_v21, %v1451_v53  ;;  %v1514_v53 = vpop.permute.xlu1 %1513 }
 0x6ff   :  { %v1609_v3 = vadd.f32 %v1577_v27, %v3120_v47  ;;  %v1610_v57 = vadd.f32 %v1578_v60, %v1504_v31  ;;  %v1655_v15 = vrot.slane %v1562_v56, 7  ;;  %v1370_v16 = vmax.f32 %v1368_v50, %v1369_v34 }
 0x700   :  { %v1601_v35 = vadd.f32 %v1569_v51, %v3127_v12  ;;  %v1611_v0 = vadd.f32 %v1579_v20, %v1505_v30  ;;  %v1657_v14 = vrot.slane %v1563_v25, 6  ;;  %v1460_v32 = vmax.f32 %v1458_v24, %v1459_v22  ;;  %v3554_v25 = vld [vmem:[#allocation26_spill] sm:$0xff] }
 0x701   :  { %v1656_v5 = vsel %vm793_vm4, %v1655_v15, %v1561_v23  ;;  %v1705_v2 = vrot.slane %v1610_v57, 7  ;;  %v1570_v28 = vsub.f32 0.0, %v1370_v16  ;;  %v1554_v13 = vadd.f32 %v1512_v46, %v1370_v16  ;;  %v3555_v15 = vld [vmem:[#allocation27_spill] sm:$0xff] }
 0x702   :  { %v1707_v19 = vrot.slane %v1611_v0, 6  ;;  %v1658_v9 = vsel %vm796_vm5, %v1657_v14, %v1656_v5  ;;  %v1580_v52 = vsub.f32 0.0, %v1460_v32  ;;  %v1564_v31 = vadd.f32 %v1530_v18, %v1460_v32 }
 0x703   :  { %v1706_v50 = vsel %vm793_vm4, %v1705_v2, %v1609_v3  ;;  %v1602_v51 = vadd.f32 %v1570_v28, %v1497_v39  ;;  %v1641_v54 = vrot.slane %v1554_v13, 7  ;;  %v1379_v30 = vmax.f32 %v1377_v45, %v1378_v36  ;;  %v3556_v28 = vld [vmem:[#allocation28_spill] sm:$0xff] }
 0x704   :  { %v1708_v24 = vsel %vm796_vm5, %v1707_v19, %v1706_v50  ;;  %v1612_v21 = vadd.f32 %v1580_v52, %v1506_v62  ;;  %v1659_v34 = vrot.slane %v1564_v31, 5  ;;  %v1386_v22 = vmax.f32 %v1384_v6, %v1385_v41 }
 0x705   :  { %v1691_v23 = vrot.slane %v1602_v51, 7  ;;  %v1642_v27 = vsel %vm793_vm4, %v1641_v54, %v1553_v63  ;;  %v1571_v60 = vsub.f32 0.0, %v1379_v30  ;;  %v1555_v56 = vadd.f32 %v1514_v53, %v1379_v30  ;;  %v3557_v51 = vld [vmem:[#allocation29_spill] sm:$0xff] }
 0x706   :  { %v1709_v46 = vrot.slane %v1612_v21, 5  ;;  %v3251_v20 = vsel %vm799_vm6, %v1659_v34, %v1658_v9  ;;  %v1387_v39 = vrot.slane %v1386_v22, 1  ;;  %v1329_v45 = vadd.f32 %v3186_v33, %v3554_v25  ;;  %v3559_v25 = vld [vmem:[#allocation17_spill] sm:$0xff] }
 0x707   :  { %v1692_v36 = vsel %vm793_vm4, %v1691_v23, %v1601_v35  ;;  %v1603_v62 = vadd.f32 %v1571_v60, %v1498_v58  ;;  %v1643_v3 = vrot.slane %v1555_v56, 6  ;;  %v1390_v6 = vsel %vm503_vm3, %v3183_v26, -inf  ;;  %v1516_v35 = vpop.permute.xlu1 %1515  ;;  %v3558_v23 = vld [vmem:[#allocation30_spill] sm:$0xff] }
 0x708   :  { %v3261_v41 = vsel %vm799_vm6, %v1709_v46, %v1708_v24  ;;  %v1388_v63 = vmax.f32 %v1386_v22, %v1387_v39  ;;  %v1389_v57 = vsel %vm503_vm3, %v1329_v45, -inf  ;;  %v1345_v16 = vadd.f32 %v3186_v33, %v3555_v15 }
 0x709   :  { %v1693_v0 = vrot.slane %v1603_v62, 6  ;;  %v1644_v14 = vsel %vm796_vm5, %v1643_v3, %v1642_v27  ;;  %v1391_v32 = vmax.f32 %v1389_v57, %v1390_v6  ;;  %v1462_v58 = vsel %vm503_vm3, %v3190_v8, -inf }
 0x70a   :  { %v1572_v5 = vsub.f32 0.0, %v1388_v63  ;;  %v1556_v2 = vadd.f32 %v1516_v35, %v1388_v63  ;;  %v1461_v26 = vsel %vm503_vm3, %v1345_v16, -inf  ;;  %v1331_v13 = vadd.f32 %v3186_v33, %v3556_v28  ;;  %v3561_v16 = vld [vmem:[#allocation19_spill] sm:$0xff] }
 0x70b   :  { %v1694_v18 = vsel %vm796_vm5, %v1693_v0, %v1692_v36  ;;  %v1392_v19 = vrot.slane %v1391_v32, 4  ;;  %v1463_v9 = vmax.f32 %v1461_v26, %v1462_v58  ;;  %v1399_v52 = vsel %vm503_vm3, %v3194_v29, -inf  ;;  %v3560_v36 = vld [vmem:[#allocation31_spill] sm:$0xff] }
 0x70c   :  { %v1604_v31 = vadd.f32 %v1572_v5, %v1499_v44  ;;  %v1645_v50 = vrot.slane %v1556_v2, 5  ;;  %v1398_v8 = vsel %vm503_vm3, %v1331_v13, -inf  ;;  %v1347_v54 = vadd.f32 %v3186_v33, %v3557_v51  ;;  %v3563_v13 = vld [vmem:[#allocation21_spill] sm:$0xff] }
 0x70d   :  { %v1393_v30 = vmax.f32 %v1391_v32, %v1392_v19  ;;  %v1464_v53 = vrot.slane %v1463_v9, 4  ;;  %v1400_v24 = vmax.f32 %v1398_v8, %v1399_v52  ;;  %v1471_v21 = vsel %vm503_vm3, %v3198_v11, -inf }
 0x70e   :  { %v1695_v34 = vrot.slane %v1604_v31, 5  ;;  %v3283_v22 = vsel %vm799_vm6, %v1645_v50, %v1644_v14  ;;  %v1470_v29 = vsel %vm503_vm3, %v1347_v54, -inf  ;;  %v1333_v44 = vadd.f32 %v3186_v33, %v3558_v23  ;;  %v3562_v14 = vld [vmem:[#allocation32_spill] sm:$0xff] }
 0x70f   :  { %v1394_v27 = vrot.slane %v1393_v30, 2  ;;  %v1465_v60 = vmax.f32 %v1463_v9, %v1464_v53  ;;  %v1401_v56 = vrot.slane %v1400_v24, 4  ;;  %v1472_v46 = vmax.f32 %v1470_v29, %v1471_v21 }
 0x710   :  { %v3289_v39 = vsel %vm799_vm6, %v1695_v34, %v1694_v18  ;;  %v1334_v45 = vadd.f32 %v3155_v48, %v3559_v25  ;;  %v1407_v11 = vsel %vm503_vm3, %v1333_v44, -inf  ;;  %v1349_v62 = vadd.f32 %v3186_v33, %v3560_v36 }
 0x711   :  { %v1395_v3 = vmax.f32 %v1393_v30, %v1394_v27  ;;  %v1466_v6 = vrot.slane %v1465_v60, 2  ;;  %v1402_v63 = vmax.f32 %v1400_v24, %v1401_v56  ;;  %v1473_v57 = vrot.slane %v1472_v46, 4  ;;  %v3564_v24 = vld [vmem:[#allocation33_spill] sm:$0xff] }
 0x712   :  { %v1408_v15 = vsel %vm503_vm3, %v1334_v45, -inf  ;;  %v1350_v0 = vadd.f32 %v3155_v48, %v3561_v16  ;;  %v1335_v35 = vadd.f32 %v3186_v33, %v3562_v14  ;;  %v1479_v2 = vsel %vm503_vm3, %v1349_v62, -inf }
 0x713   :  { %v1467_v32 = vmax.f32 %v1465_v60, %v1466_v6  ;;  %v1403_v58 = vrot.slane %v1402_v63, 2  ;;  %v1474_v5 = vmax.f32 %v1472_v46, %v1473_v57  ;;  %v1396_v26 = vrot.slane %v1395_v3, 1  ;;  %v3565_v60 = vld [vmem:[#allocation23_spill] sm:$0xff] }
 0x714   :  { %v1409_v28 = vmax.f32 %v1407_v11, %v1408_v15  ;;  %v1336_v18 = vadd.f32 %v3155_v48, %v3563_v13  ;;  %v1480_v52 = vsel %vm503_vm3, %v1350_v0, -inf  ;;  %v1416_v31 = vsel %vm503_vm3, %v1335_v35, -inf }
 0x715   :  { %v1404_v19 = vmax.f32 %v1402_v63, %v1403_v58  ;;  %v1475_v9 = vrot.slane %v1474_v5, 2  ;;  %v1468_v50 = vrot.slane %v1467_v32, 1  ;;  %v1481_v51 = vmax.f32 %v1479_v2, %v1480_v52 }
 0x716   :  { %v1410_v8 = vrot.slane %v1409_v28, 4  ;;  %v1417_v53 = vsel %vm503_vm3, %v1336_v18, -inf  ;;  %v1351_v21 = vadd.f32 %v3186_v33, %v3564_v24  ;;  %v3309_v44 = vmax.f32 %v1395_v3, %v1396_v26 }
 0x717   :  { %v1405_v54 = vrot.slane %v1404_v19, 1  ;;  %v1476_v30 = vmax.f32 %v1474_v5, %v1475_v9  ;;  %v1482_v29 = vrot.slane %v1481_v51, 4  ;;  %v1418_v23 = vmax.f32 %v1416_v31, %v1417_v53 }
 0x718   :  { %v1411_v34 = vmax.f32 %v1409_v28, %v1410_v8  ;;  %v1352_v56 = vadd.f32 %v3155_v48, %v3565_v60  ;;  %v3313_v11 = vmax.f32 %v1467_v32, %v1468_v50  ;;  %v1488_v62 = vsel %vm503_vm3, %v1351_v21, -inf }
 0x719   :  { %v1477_v27 = vrot.slane %v1476_v30, 1  ;;  %v1483_v25 = vmax.f32 %v1481_v51, %v1482_v29  ;;  %v1419_v45 = vrot.slane %v1418_v23, 4  ;;  %v3315_v36 = vmax.f32 %v1404_v19, %v1405_v54 }
 0x71a   :  { %v1412_v46 = vrot.slane %v1411_v34, 2  ;;  %v1573_v57 = vsub.f32 0.0, %v3309_v44  ;;  %v1489_v15 = vsel %vm503_vm3, %v1352_v56, -inf  ;;  %v1500_v35 = vrot.slane %v3127_v12, 4 }
 0x71b   :  { %v1484_v33 = vrot.slane %v1483_v25, 2  ;;  %v1420_v63 = vmax.f32 %v1418_v23, %v1419_v45  ;;  %v3319_v3 = vmax.f32 %v1476_v30, %v1477_v27  ;;  %v1490_v14 = vmax.f32 %v1488_v62, %v1489_v15 }
 0x71c   :  { %v1413_v6 = vmax.f32 %v1411_v34, %v1412_v46  ;;  %v1581_v32 = vsub.f32 0.0, %v3313_v11  ;;  %v1574_v58 = vsub.f32 0.0, %v3315_v36  ;;  %v1605_v13 = vadd.f32 %v1573_v57, %v1500_v35 }
 0x71d   :  { %v1485_v48 = vmax.f32 %v1483_v25, %v1484_v33  ;;  %v1421_v0 = vrot.slane %v1420_v63, 2  ;;  %v1491_v28 = vrot.slane %v1490_v14, 4  ;;  %v1507_v18 = vrot.slane %v3120_v47, 4 }
 0x71e   :  { %v1414_v16 = vrot.slane %v1413_v6, 1  ;;  %v1501_v19 = vrot.slane %v3127_v12, 5  ;;  %v1582_v9 = vsub.f32 0.0, %v3319_v3  ;;  %v1508_v30 = vrot.slane %v3120_v47, 5 }
 0x71f   :  { %v1486_v2 = vrot.slane %v1485_v48, 1  ;;  %v1422_v26 = vmax.f32 %v1420_v63, %v1421_v0  ;;  %v1492_v50 = vmax.f32 %v1490_v14, %v1491_v28  ;;  %v1613_v8 = vadd.f32 %v1581_v32, %v1507_v18 }
 0x720   :  { %v3325_v5 = vmax.f32 %v1413_v6, %v1414_v16  ;;  %v1606_v54 = vadd.f32 %v1574_v58, %v1501_v19  ;;  %v1697_v21 = vrot.slane %v1605_v13, 4  ;;  %v1502_v34 = vrot.slane %v3127_v12, 6 }
 0x721   :  { %v3330_v52 = vmax.f32 %v1485_v48, %v1486_v2  ;;  %v1423_v31 = vrot.slane %v1422_v26, 1  ;;  %v1493_v24 = vrot.slane %v1492_v50, 2  ;;  %v1614_v23 = vadd.f32 %v1582_v9, %v1508_v30 }
 0x722   :  { %v1575_v51 = vsub.f32 0.0, %v3325_v5  ;;  %v1698_v56 = vsel %vm802_vm7, %v1697_v21, %v3289_v39  ;;  %v1711_v46 = vrot.slane %v1613_v8, 4  ;;  %v1509_v45 = vrot.slane %v3120_v47, 6 }
 0x723   :  { %v3334_v53 = vmax.f32 %v1422_v26, %v1423_v31  ;;  %v1583_v29 = vsub.f32 0.0, %v3330_v52  ;;  %v1494_v60 = vmax.f32 %v1492_v50, %v1493_v24  ;;  %v1699_v62 = vrot.slane %v1606_v54, 3 }
 0x724   :  { %v1607_v25 = vadd.f32 %v1575_v51, %v1502_v34  ;;  %v1503_v6 = vrot.slane %v3127_v12, 7  ;;  %v1712_v63 = vsel %vm802_vm7, %v1711_v46, %v3261_v41  ;;  %v1713_v15 = vrot.slane %v1614_v23, 3 }
 0x725   :  { %v1576_v27 = vsub.f32 0.0, %v3334_v53  ;;  %v1495_v33 = vrot.slane %v1494_v60, 1  ;;  %v1615_v57 = vadd.f32 %v1583_v29, %v1509_v45  ;;  %v1700_v0 = vsel %vm805_vm8, %v1699_v62, %v1698_v56  ;;  %v2365_v56 = vld [vmem:[#allocation5 + $0x178] sm:$0xff]  }
 0x726   :  { %v1701_v14 = vrot.slane %v1607_v25, 2  ;;  %v1510_v39 = vrot.slane %v3120_v47, 7  ;;  %v1714_v58 = vsel %vm805_vm8, %v1713_v15, %v1712_v63 }
 0x727   :  { %v1608_v16 = vadd.f32 %v1576_v27, %v1503_v6  ;;  %v3345_v48 = vmax.f32 %v1494_v60, %v1495_v33  ;;  %v1715_v2 = vrot.slane %v1615_v57, 2  ;;  %v2358_v27 = vld [vmem:[#allocation5 + $0x140] sm:$0xff]   ;;  %v3566_v60 = vmov 0  }
 0x728   :  { %v1702_v12 = vsel %vm808_vm9, %v1701_v14, %v1700_v0  ;;  %1805 = vmatpush1.bf16.msra.mxu0 %v2358_v27 }
 0x729   :  { %v1584_v32 = vsub.f32 0.0, %v3345_v48  ;;  %v1703_v26 = vrot.slane %v1608_v16, 1  ;;  %v1716_v41 = vsel %vm808_vm9, %v1715_v2, %v1714_v58  ;;  %1806 = vmatprep.subr.bf16.mxu0 %v3566_v60 }
 0x72b   :  { %v1616_v28 = vadd.f32 %v1584_v32, %v1510_v39  ;;  %v1704_v9 = vsel %vm811_vm10, %v1703_v26, %v1702_v12 }
 0x72d   :  { %v1717_v13 = vrot.slane %v1616_v28, 1 }
 0x72f   :  { %v1718_v31 = vsel %vm811_vm10, %v1717_v13, %v1716_v41  ;;  %v2366_v13 = vld [vmem:[#allocation5 + $0x180] sm:$0xff]  }
 0x730   :  { %v2332_v50 = vpack.i.bf16 %v1718_v31, %v1704_v9 }
 0x7c2   :  { %v1260_v8 = vpop.f32.mrb[12].mxu0 }
 0x7c3   :  { %v1267_v47 = vmul.f32 %v2969_v42, %v1260_v8  ;;  %v2248_v51 = vpop.f32.mrb[13].mxu0 }
 0x7c4   :  { %v1263_v54 = vpop.f32.mrb[14].mxu0 }
 0x7c5   :  { %v1268_v24 = vmul.f32 %v2972_v10, %v1263_v54  ;;  %v1269_v21 = vmul.f32 %v1267_v47, %v1267_v47  ;;  %v2249_v29 = vpop.f32.mrb[15].mxu0  ;;  %v1291_v10 = vadd.f32 %v3231_v59, %v1267_v47  ;;  %v2362_v59 = vld [vmem:[#allocation5 + $0x160] sm:$0xff]  }
 0x7c7   :  { %1273 = vrot.lane.b32.xlu1 %v1269_v21, %s2477_s25  ;;  %v1270_v23 = vmul.f32 %v1268_v24, %v1268_v24  ;;  %v1292_v42 = vadd.f32 %v3220_v17, %v1268_v24  ;;  %v2361_v17 = vld [vmem:[#allocation5 + $0x158] sm:$0xff]  }
 0x7c9   :  { %1275 = vrot.lane.b32.xlu0 %v1270_v23, %s2477_s25 }
 0x7cb   :  { %1517 = vrot.lane.b32.xlu1 %v1500_v35, %s2478_s26  ;;  %v2327_v35 = vpack.i.bf16 %v1292_v42, %v1291_v10 }
 0x7cd   :  { %1531 = vrot.lane.b32.xlu0 %v1507_v18, %s2478_s26  ;;  %v2359_v18 = vld [vmem:[#allocation5 + $0x148] sm:$0xff]  }
 0x7ce   :  { %1807 = vmatpush1.bf16.msra.mxu0 %v2359_v18 }
 0x7cf   :  { %1519 = vrot.lane.b32.xlu1 %v1501_v19, %s2478_s26  ;;  %v2360_v19 = vld [vmem:[#allocation5 + $0x150] sm:$0xff]   ;;  %1808 = vmatprep.subr.bf16.mxu0 %v3566_v60 }
 0x7d1   :  { %1533 = vrot.lane.b32.xlu0 %v1508_v30, %s2478_s26  ;;  %v2363_v30 = vld [vmem:[#allocation5 + $0x168] sm:$0xff]  }
 0x7d2   :  { %1809 = vmatpush1.bf16.msra.mxu0 %v2360_v19 }
 0x7d3   :  { %1521 = vrot.lane.b32.xlu1 %v1502_v34, %s2478_s26  ;;  %1810 = vmatprep.subr.bf16.mxu0 %v3566_v60  ;;  %v2364_v34 = vld [vmem:[#allocation5 + $0x170] sm:$0xff]  }
 0x7d5   :  { %1535 = vrot.lane.b32.xlu0 %v1509_v45, %s2478_s26 }
 0x7d6   :  { %1811 = vmatpush1.bf16.msra.mxu0 %v2361_v17 }
 0x7d7   :  { %1523 = vrot.lane.b32.xlu1 %v1503_v6, %s2478_s26  ;;  %1812 = vmatprep.subr.bf16.mxu0 %v3566_v60 }
 0x7d9   :  { %1537 = vrot.lane.b32.xlu0 %v1510_v39, %s2478_s26 }
 0x7da   :  { %1813 = vmatpush1.bf16.msra.mxu0 %v2362_v59 }
 0x7db   :  { %2328 = vrot.lane.b32.xlu1 %v2327_v35, %s2477_s25  ;;  %1814 = vmatprep.subr.bf16.mxu0 %v3566_v60 }
 0x7de   :  { %1815 = vmatpush1.bf16.msra.mxu0 %v2363_v30 }
 0x7df   :  { %2333 = vrot.lane.b32.xlu1 %v2332_v50, %s2473_s1  ;;  %1816 = vmatprep.subr.bf16.mxu0 %v3566_v60 }
 0x7e2   :  { %1817 = vmatpush1.bf16.msra.mxu0 %v2364_v34 }
 0x7e3   :  { %1818 = vmatprep.subr.bf16.mxu0 %v3566_v60 }
 0x7e6   :  { %1819 = vmatpush1.bf16.msra.mxu0 %v2365_v56 }
 0x7e7   :  { %1820 = vmatprep.subr.bf16.mxu0 %v3566_v60 }
 0x7ea   :  { %1821 = vmatpush1.bf16.msra.mxu0 %v2366_v13  ;;  %v2368_v13 = vld [vmem:[#allocation5 + $0x190] sm:$0xff]  }
 0x7eb   :  { %1822 = vmatprep.subr.bf16.mxu0 %v3566_v60  ;;  %2251 = vmatpush3.bf16.msra.mxu1 %v2368_v13 }
 0x7ec   :  { %2252 = vmatprep.subr.bf16.mxu1 %v3544_v49 }
 0x839   :  { %v1274_v46 = vpop.permute.xlu1 %1273 }
 0x83a   :  { %v1279_v25 = vsub.f32 %v1267_v47, %v1274_v46 }
 0x83b   :  { %v1276_v45 = vpop.permute.xlu0 %1275 }
 0x83c   :  { %v1281_v62 = vmax.f32 %v1279_v25, 0.0  ;;  %v1280_v6 = vsub.f32 %v1268_v24, %v1276_v45 }
 0x83d   :  { %v1518_v33 = vpop.permute.xlu1 %1517 }
 0x83e   :  { %v1293_v63 = vadd.f32 1e-05, %v1281_v62  ;;  %v1282_v57 = vmax.f32 %v1280_v6, 0.0  ;;  %v1557_v39 = vadd.f32 %v1518_v33, %v3309_v44 }
 0x83f   :  { %v1532_v15 = vpop.permute.xlu0 %1531 }
 0x840   :  { %2389 = vrsqrt.f32 %v1293_v63  ;;  %v1294_v16 = vadd.f32 1e-05, %v1282_v57  ;;  %v1565_v32 = vadd.f32 %v1532_v15, %v3313_v11  ;;  %v1647_v9 = vrot.slane %v1557_v39, 4 }
 0x841   :  { %v1520_v0 = vpop.permute.xlu1 %1519  ;;  %vm1297_vm5 = vcmp.eq.f32.partialorder %v1293_v63, inf  ;;  %v1300_v59 = vand.u32 2147483648, %v1293_v63 }
 0x842   :  { %2391 = vrsqrt.f32 %v1294_v16  ;;  %v1558_v2 = vadd.f32 %v1520_v0, %v3315_v36  ;;  %v1661_v31 = vrot.slane %v1565_v32, 4  ;;  %v1648_v21 = vsel %vm802_vm7, %v1647_v9, %v3283_v22 }
 0x843   :  { %v1534_v14 = vpop.permute.xlu0 %1533  ;;  %vm1304_vm4 = vcmp.eq.f32.partialorder %v1294_v16, inf  ;;  %vm1306_vm6 = vcmp.eq.f32.partialorder %v1294_v16, 0.0 }
 0x844   :  { %v1566_v12 = vadd.f32 %v1534_v14, %v3319_v3  ;;  %v1649_v47 = vrot.slane %v1558_v2, 3  ;;  %v1662_v29 = vsel %vm802_vm7, %v1661_v31, %v3251_v20  ;;  %v1307_v20 = vand.u32 2147483648, %v1294_v16  ;;  %v2369_v31 = vld [vmem:[#allocation5 + $0x198] sm:$0xff]  }
 0x845   :  { %v1522_v58 = vpop.permute.xlu1 %1521  ;;  %vm1299_vm7 = vcmp.eq.f32.partialorder %v1293_v63, 0.0  ;;  %2253 = vmatpush3.bf16.msra.mxu1 %v2369_v31 }
 0x846   :  { %v1559_v26 = vadd.f32 %v1522_v58, %v3325_v5  ;;  %v1663_v51 = vrot.slane %v1566_v12, 3  ;;  %2258 = vmatprep.subr.bf16.mxu1 %v3544_v49 }
 0x847   :  { %v1536_v28 = vpop.permute.xlu0 %1535 }
 0x848   :  { %v1567_v41 = vadd.f32 %v1536_v28, %v3330_v52  ;;  %v1651_v11 = vrot.slane %v1559_v26, 2  ;;  %v2367_v52 = vld [vmem:[#allocation5 + $0x188] sm:$0xff]   ;;  %v1664_v10 = vsel %vm805_vm8, %v1663_v51, %v1662_v29 }
 0x849   :  { %v1524_v50 = vpop.permute.xlu1 %1523  ;;  %1823 = vmatpush1.bf16.msra.mxu0 %v2367_v52 }
 0x84a   :  { %v2390_v8 = vpop.eup %2389  ;;  %v1560_v44 = vadd.f32 %v1524_v50, %v3334_v53  ;;  %v1665_v54 = vrot.slane %v1567_v41, 2  ;;  %v1650_v53 = vsel %vm805_vm8, %v1649_v47, %v1648_v21 }
 0x84b   :  { %v1538_v36 = vpop.permute.xlu0 %1537  ;;  %v1296_v23 = vmul.f32 %v2390_v8, %v1293_v63  ;;  %v1652_v35 = vsel %vm808_vm9, %v1651_v11, %v1650_v53 }
 0x84c   :  { %v2392_v3 = vpop.eup %2391  ;;  %v1653_v5 = vrot.slane %v1560_v44, 1  ;;  %v1568_v24 = vadd.f32 %v1538_v36, %v3345_v48  ;;  %v1666_v48 = vsel %vm808_vm9, %v1665_v54, %v1664_v10  ;;  %vm2081_vm9 = vcmask 64512  }
 0x84d   :  { %v1303_v42 = vmul.f32 %v2392_v3, %v1294_v16  ;;  %v1298_v17 = vsel %vm1297_vm5, %v1293_v63, %v1296_v23  ;;  %v2329_v46 = vpop.permute.xlu1 %2328 }
 0x84e   :  { %v1667_v27 = vrot.slane %v1568_v24, 1  ;;  %v1654_v60 = vsel %vm811_vm10, %v1653_v5, %v1652_v35  ;;  %v1301_v34 = vsel %vm1299_vm7, %v1300_v59, %v1298_v17  ;;  %v2331_v25 = vunpack.i.h.bf16 %v2329_v46  ;;  %v3568_v35 = vld [vmem:[#allocation12_spill] sm:$0xff] }
 0x84f   :  { %v1305_v18 = vsel %vm1304_vm4, %v1294_v16, %v1303_v42  ;;  %v2330_v45 = vunpack.i.l.bf16 %v2329_v46 }
 0x850   :  { %v1668_v22 = vsel %vm811_vm10, %v1667_v27, %v1666_v48  ;;  %v1308_v30 = vsel %vm1306_vm6, %v1307_v20, %v1305_v18  ;;  %v1734_v15 = vsel %vm129_vm2, %v3112_v55, %v2331_v25  ;;  %v2371_v27 = vld [vmem:[#allocation5 + $0x1e8] sm:$0xff]  }
 0x851   :  { %v2322_v19 = vpack.i.bf16 %v1668_v22, %v1654_v60  ;;  %v2337_v56 = vpack.i.bf16 %v1308_v30, %v1301_v34  ;;  %v2334_v62 = vpop.permute.xlu1 %2333  ;;  %v1733_v16 = vsel %vm129_vm2, %v3109_v40, %v2330_v45 }
 0x852   :  { %v2336_v0 = vunpack.i.h.bf16 %v2334_v62  ;;  %v2335_v14 = vunpack.i.l.bf16 %v2334_v62 }
 0x853   :  { %2323 = vrot.lane.b32.xlu0 %v2322_v19, %s2473_s1 }
 0x857   :  { %2338 = vrot.lane.b32.xlu0 %v2337_v56, %s2478_s26 }
 0x8c5   :  { %v2324_v6 = vpop.permute.xlu0 %2323 }
 0x8c6   :  { %v2326_v33 = vunpack.i.h.bf16 %v2324_v6  ;;  %v2325_v57 = vunpack.i.l.bf16 %v2324_v6 }
 0x8c8   :  { %v1736_v63 = vsel %vm503_vm3, %v1734_v15, %v2326_v33  ;;  %v1735_v39 = vsel %vm503_vm3, %v1733_v16, %v2325_v57 }
 0x8c9   :  { %v2339_v32 = vpop.permute.xlu0 %2338  ;;  %v1737_v12 = vsel %vm895_vm15, %v1735_v39, %v2335_v14  ;;  %v1738_v26 = vsel %vm895_vm15, %v1736_v63, %v2336_v0 }
 0x8ca   :  { %v2341_v58 = vunpack.i.h.bf16 %v2339_v32  ;;  %v2340_v2 = vunpack.i.l.bf16 %v2339_v32  ;;  %v1739_v41 = vpack.c.bf16 %v1738_v26, %v1737_v12 }
 0x8cc   :  { %v1740_v28 = vpack.c.bf16 %v2341_v58, %v2340_v2 }
 0x8ce   :  { %2181 = vmatprep.mubr.msk.bf16.mxu0 %vm129_vm2, %v1740_v28 }
 0x8cf   :  { %1837 = vmatmul.mubr.bf16.vlgmr.msra.gmra.mrb[16].mxu0 %v1739_v41  ;;  %v2080_v41 = vld [vmem:[#allocation5 + $0x280] sm:$0xf] }
 0x9a2   :  { %v1838_v9 = vpop.f32.mrb[16].mxu0 }
 0x9a3   :  { %v1851_v50 = vmul.f32 %v1838_v9, %v3067_v1  ;;  %v1840_v8 = vpop.f32.mrb[17].mxu0  ;;  %v1863_v11 = vmul.f32 %v1838_v9, %v3075_v4  ;;  %v3567_v1 = vld [vmem:[#allocation11_spill] sm:$0xff] }
 0x9a4   :  { %v1841_v47 = vpop.f32.mrb[18].mxu0  ;;  %v1848_v36 = vrot.slane %v3092_v43, %v3567_v1  ;;  %v2370_v43 = vld [vmem:[#allocation5 + $0x1e0] sm:$0xff]  }
 0x9a5   :  { %v1852_v51 = vmul.f32 %v1841_v47, %v3071_v38  ;;  %1855 = vrot.lane.b32.xlu1 %v1851_v50, %s2478_s26  ;;  %v1843_v44 = vpop.f32.mrb[19].mxu0  ;;  %v1864_v54 = vmul.f32 %v1841_v47, %v3080_v37 }
 0x9a6   :  { %v1849_v38 = vadd.f32 %v1848_v36, %v1838_v9  ;;  %v1850_v52 = vadd.f32 %v1848_v36, %v1841_v47 }
 0x9a7   :  { %1857 = vrot.lane.b32.xlu0 %v1852_v51, %s2478_s26 }
 0x9a9   :  { %1867 = vrot.lane.b32.xlu1 %v1863_v11, %s2473_s1 }
 0x9ab   :  { %1869 = vrot.lane.b32.xlu0 %v1864_v54, %s2473_s1  ;;  %v57_v54 = vld [vmem:[%s3462_s4 + $0x8] sm:$0x1]  ;;  %s2445_s1 = scalar_lea.vmem %s2138_s15, 32 }
 0x9ac   :  { %p2447_p4 = scmp.lt.s32.totalorder %s2445_s1, %s2441_s16 }
 0x9ae   :  { %p2448_p5 = por %p2447_p4, %p2446_p3 }
 0x9b0   :  { %p2449_p6 = pnand %p2448_p5, %p2442_p2 }
 0xa17   :  { %v1856_v3 = vpop.permute.xlu1 %1855 }
 0xa18   :  { %v1861_v24 = vadd.f32 %v1856_v3, %v1849_v38 }
 0xa19   :  { %v1858_v5 = vpop.permute.xlu0 %1857 }
 0xa1a   :  { %v1862_v29 = vadd.f32 %v1858_v5, %v1850_v52 }
 0xa1b   :  { %v1868_v21 = vpop.permute.xlu1 %1867 }
 0xa1c   :  { %v1873_v23 = vadd.f32 %v1868_v21, %v1861_v24 }
 0xa1d   :  { %v1870_v4 = vpop.permute.xlu0 %1869 }
 0xa1e   :  { %v1874_v42 = vadd.f32 %v1870_v4, %v1862_v29  ;;  %v1875_v53 = vmul.f32 %v1873_v23, %v3087_v61  ;;  %v2396_v61 = vld [vmem:[%s3462_s4] sm:$0xff] }
 0xa1f   :  { %v2032_v9 = vrot.slane %v2396_v61, 7 }
 0xa20   :  { %v1876_v10 = vmul.f32 %v1874_v42, %v3085_v7  ;;  %v1881_v7 = vrot.slane %v2396_v61, %v3568_v35 }
 0xa22   :  { %v1877_v37 = vpack.c.bf16 %v1876_v10, %v1875_v53 }
 0xa24   :  { %2255 = vmatmul.mubr.msk.bf16.vlgmr.msra.gmra.mrb[8].mxu1 %vm129_vm2, %v1877_v37 }
 0xa25   :  { %2262 = vmatprep.mubr.msk.bf16.mxu1 %vm2476_vm0, %v3544_v49  ;;  %2259 = vmatpush3.bf16.msra.mxu1 %v2370_v43 }
 0xa26   :  { %2260 = vmatprep.subr.bf16.mxu1 %v3544_v49 }
 0xa29   :  { %2261 = vmatpush3.bf16.msra.mxu1 %v2371_v27 }
 0xa2a   :  { %2266 = vmatprep.subr.bf16.mxu1 %v3544_v49 }
 0xaf7   :  { %v1931_v48 = vpop.f32.mrb[8].mxu1 }
 0xaf8   :  { %v1932_v18 = vadd.f32 %v1931_v48, %v1881_v7  ;;  %v2256_v60 = vpop.f32.mrb[9].mxu1 }
 0xaf9   :  { %v1934_v22 = vpop.f32.mrb[10].mxu1 }
 0xafa   :  { %vm1938_vm3 = vcmp.gt.f32.partialorder %v1932_v18, 0.0  ;;  %v1940_v20 = vmul.f32 0.01, %v1932_v18  ;;  %v1935_v19 = vadd.f32 %v1934_v22, %v1881_v7  ;;  %v2257_v17 = vpop.f32.mrb[11].mxu1 }
 0xafc   :  { %v1942_v59 = vsel %vm1938_vm3, %v1932_v18, %v1940_v20  ;;  %vm1939_vm8 = vcmp.gt.f32.partialorder %v1935_v19, 0.0  ;;  %v1941_v30 = vmul.f32 0.01, %v1935_v19 }
 0xafd   :  { %v1944_v34 = vadd.f32 %v1942_v59, %v3109_v40  ;;  %v2372_v40 = vld [vmem:[#allocation5 + $0x230] sm:$0xff]  }
 0xafe   :  { %v1943_v56 = vsel %vm1939_vm8, %v1935_v19, %v1941_v30 }
 0xaff   :  { %v1945_v46 = vadd.f32 %v1943_v56, %v3112_v55  ;;  %v1946_v25 = vsel %vm129_vm2, %v1944_v34, 0.0  ;;  %v1976_v55 = vrot.slane %v2396_v61, 6 }
 0xb01   :  { %v1947_v45 = vsel %vm129_vm2, %v1945_v46, 0.0 }
 0xb02   :  { %v1948_v62 = vadd.f32 %v1947_v45, %v1946_v25 }
 0xb04   :  { %v1949_v6 = vrot.slane %v1948_v62, 4 }
 0xb06   :  { %v1950_v33 = vadd.f32 %v1949_v6, %v1948_v62 }
 0xb08   :  { %v1951_v57 = vrot.slane %v1950_v33, 2 }
 0xb0a   :  { %v1952_v15 = vadd.f32 %v1951_v57, %v1950_v33 }
 0xb0c   :  { %v1953_v16 = vrot.slane %v1952_v15, 1 }
 0xb0e   :  { %v1954_v0 = vadd.f32 %v1953_v16, %v1952_v15 }
 0xb10   :  { %v1956_v14 = vmul.f32 0.0625, %v1954_v0 }
 0xb12   :  { %v1957_v63 = vpack.c.bf16 %v1956_v14, %v1956_v14 }
 0xb14   :  { %2263 = vmatmul.mubr.msk.bf16.vlgmr.msra.gmra.mrb[12].mxu1 %vm129_vm2, %v1957_v63  ;;  %vm2085_vm2 = vcmask 1043456  }
 0xb15   :  { %2268 = vmatprep.mubr.msk.bf16.mxu1 %vm2476_vm0, %v3544_v49  ;;  %2267 = vmatpush3.bf16.msra.mxu1 %v2372_v40  ;;  %v2087_v13 = vsel %vm2085_vm2, %v2080_v41, 0 }
 0xb16   :  { %2272 = vmatprep.subr.bf16.mxu1 %v3544_v49 }
 0xbe7   :  { %v2015_v39 = vpop.f32.mrb[12].mxu1 }
 0xbe8   :  { %v2016_v32 = vadd.f32 %v2015_v39, %v1976_v55  ;;  %v2264_v58 = vpop.f32.mrb[13].mxu1 }
 0xbe9   :  { %v2018_v2 = vpop.f32.mrb[14].mxu1 }
 0xbea   :  { %v2021_v12 = vmax.f32 %v2016_v32, 0.0  ;;  %v2265_v26 = vpop.f32.mrb[15].mxu1 }
 0xbec   :  { %v2022_v28 = vpack.c.bf16 %v2021_v12, %v2021_v12 }
 0xbee   :  { %2269 = vmatmul.mubr.msk.bf16.vlgmr.msra.gmra.mrb[16].mxu1 %vm58_vm1, %v2022_v28 }
 0xbef   :  { %2274 = vmatprep.mubr.msk.bf16.mxu1 %vm2476_vm0, %v3544_v49  ;;  %2273 = vmatpush3.bf16.msra.mxu1 %v2087_v13  ;;  %vm2129_vm0 = vcmask 0  }
 0xcc1   :  { %v2071_v31 = vpop.f32.mrb[16].mxu1 }
 0xcc2   :  { %v2072_v50 = vadd.f32 %v2071_v31, %v2032_v9  ;;  %v2270_v8 = vpop.f32.mrb[17].mxu1 }
 0xcc3   :  { %v2074_v47 = vpop.f32.mrb[18].mxu1 }
 0xcc4   :  { %v2077_v51 = vmax.f32 %v2072_v50, 0.0  ;;  %v2271_v44 = vpop.f32.mrb[19].mxu1 }
 0xcc6   :  { %v2078_v11 = vpack.c.bf16 %v2077_v51, %v2077_v51 }
 0xcc8   :  { %2275 = vmatmul.mubr.msk.bf16.vlgmr.msra.gmra.mrb[20].mxu1 %vm2081_vm9, %v2078_v11 }
 0xd9b   :  { %v2123_v49 = vpop.f32.mrb[20].mxu1 }
 0xd9c   :  { %v2124_v1 = vadd.f32 %v2123_v49, %v57_v54  ;;  %v2276_v36 = vpop.f32.mrb[21].mxu1 }
 0xd9d   :  { %v2126_v3 = vpop.f32.mrb[22].mxu1 }
 0xd9e   :  { %v2277_v38 = vpop.f32.mrb[23].mxu1  ;;  %2130 = vst.msk [vmem:[#allocation7] sm:$0x1] %vm2129_vm0, %v2124_v1 }
 0xd9f   :  { %2452 = shalt.err (!%p2449_p6)
}
 0xda0   :  { %s2453_s18 = scalar_lea.hbm %s3463_s5, 16 }
 0xda1   :  { %p2454_p7 = scmp.ne.s32.totalorder %s3463_s5, %s2453_s18  ;;  %p2457_p8 = scmp.lt.u32.totalorder %s2453_s18, %s3463_s5 }
 0xda3   :  { %p2459_p9 = pnand %p2457_p8, %p2454_p7 }
 0xda5   :  { %2462 = shalt.err (!%p2459_p9)
}
 0xda6   :  { %2140 = dma.vmem_to_hbm [thread:$0]  %s2138_s15, 16, %s3463_s5, [#allocation4]  }
 0xda7   :  { %2467 = dma.done.wait [#allocation4], 16  }
 0xda8   :  { %2468 = vsyncadd [#allocation4], 4294967280 }
 0xda9   :  { %2144 = vsyncpa [#allocation3], 1 }
 0xdaa   :  { %2145 = vsyncpa [#allocation6], 1 }
 0xdab   :  { %2146 = vsyncpa [#allocation4], 1 }

</bundles_post_ra>
